<compile_context>
chip_gen: v6e
topology: v6e:2x2x1
jax: 0.10.0
libtpu: 0.0.40
codegen_flags: <defaults>
</compile_context>

<pallas_src>
import jax
import jax.numpy as jnp
import numpy as np
from jax.experimental import pallas as pl
from jax.experimental.pallas import tpu as pltpu


def _pool_fc_kernel(feat_ref, w_ref, b_ref, out_ref):
    """AdaptiveAvgPool2d((1,1)) + Flatten + Linear(C, 1), fused for a batch tile.

    feat_ref : (Bt, C, N)  features (f32 or bf16); N = H*W on lanes, C on sublanes
    w_ref    : (1, C)      f32 fc1 weight, pre-scaled by 1/N, lane-dense, resident
    b_ref    : (1, 1)      f32 fc1 bias (SMEM scalar)
    out_ref  : (Bt, 1)     f32
    """
    x = feat_ref[...].astype(jnp.float32)              # upcast if bf16 input
    pooled = jnp.sum(x, axis=-1)                        # (Bt, C): XLU lane reduce only
    weighted = pooled * w_ref[...]                      # (Bt, C): just Bt*C VPU multiplies
    res = jnp.sum(weighted, axis=-1, keepdims=True)     # (Bt, 1): lane reduce
    out_ref[...] = (res + b_ref[0, 0]).astype(out_ref.dtype)


def _pick_block_b(b, c, n, itemsize):
    """Batch-tile size: MiB-scale blocks for DMA efficiency, capped by a VMEM
    budget safe on v5e/v6e/v7x, and >= 2 grid steps when possible (megacore)."""
    # Per-sample working set: double-buffered streamed block (2 * itemsize)
    # plus an f32 compute copy (4 B) in the worst (bf16-input) case.
    per_sample = c * n * (2 * itemsize + 4)
    budget = 24 << 20                        # headroom inside the 32 MiB scoped limit
    bt = max(1, min(b, budget // max(1, per_sample)))
    if bt == b and b >= 2:
        bt = pl.cdiv(b, 2)                   # >= 2 grid steps so both v7x TCs get work
    if bt < b and bt > 8:
        bt = (bt // 8) * 8                   # align the (Bt, 1) output block sublane dim
    return bt


def ch3effb7stem_head(feat_nchw, w1, b1, *, block_b=None):
    """feat_nchw: (B, C, H, W) backbone feature map (f32 or bf16).
    w1: (1, C) fc1 weight (PyTorch nn.Linear(C, 1) layout). b1: (1,) bias.
    Returns (B, 1) float32 = fc1(flatten(avgpool(feat)))."""
    b, c, h, w_sp = feat_nchw.shape
    n = h * w_sp
    # Free contiguous view (no extra HBM pass): channels on sublanes, spatial on lanes.
    x = feat_nchw.reshape(b, c, n)

    # Fold 1/N into the weight on the host; keep it lane-dense as (1, C).
    w_row = (w1.reshape(1, c).astype(jnp.float32)) * (1.0 / float(n))
    b_smem = b1.reshape(1, 1).astype(jnp.float32)

    bt = block_b if block_b is not None else _pick_block_b(b, c, n, x.dtype.itemsize)
    grid = (pl.cdiv(b, bt),)

    return pl.pallas_call(
        _pool_fc_kernel,
        out_shape=jax.ShapeDtypeStruct((b, 1), jnp.float32),
        grid=grid,
        in_specs=[
            pl.BlockSpec((bt, c, n), lambda i: (i, 0, 0)),         # streamed batch tile
            pl.BlockSpec((1, c), lambda i: (0, 0)),                 # resident weight row
            pl.BlockSpec(memory_space=pltpu.MemorySpace.SMEM),      # scalar bias
        ],
        out_specs=pl.BlockSpec((bt, 1), lambda i: (i, 0)),
        compiler_params=pltpu.CompilerParams(
            dimension_semantics=("parallel",),
            vmem_limit_bytes=32 * 1024 * 1024,
        ),
    )(x, w_row, b_smem)


def _reference(feat_nchw, w1, b1):
    """Pure-JAX reference: fc1(flatten(AdaptiveAvgPool2d((1,1))(feat)))."""
    pooled = jnp.mean(feat_nchw.astype(jnp.float32), axis=(2, 3))   # (B, C)
    return pooled @ w1.astype(jnp.float32).T + b1.astype(jnp.float32)


if __name__ == "__main__":
    # Small shapes consistent with the module: the backbone feature map
    # (B, num_features, H', W') feeding avgpool -> flatten -> Linear(C, 1).
    B, C, H, W = 16, 128, 16, 16

    key = jax.random.PRNGKey(0)
    k_feat, k_w, k_b = jax.random.split(key, 3)
    feat = jax.random.normal(k_feat, (B, C, H, W), dtype=jnp.float32)
    # fc1 = nn.Linear(C, 1): weight (1, C), bias (1,)
    w1 = (jax.random.normal(k_w, (1, C)) * 0.05).astype(jnp.float32)
    b1 = (jax.random.normal(k_b, (1,)) * 0.05).astype(jnp.float32)

    out = jax.block_until_ready(ch3effb7stem_head(feat, w1, b1))
    ref = jax.block_until_ready(_reference(feat, w1, b1))
    assert out.shape == (B, 1)
    np.testing.assert_allclose(np.asarray(out), np.asarray(ref),
                               rtol=1e-4, atol=1e-4)

    # bf16 feature-map path (halves HBM traffic; kernel upcasts before reducing).
    feat_bf16 = feat.astype(jnp.bfloat16)
    out_bf = jax.block_until_ready(ch3effb7stem_head(feat_bf16, w1, b1))
    ref_bf = jax.block_until_ready(_reference(feat_bf16, w1, b1))
    np.testing.assert_allclose(np.asarray(out_bf), np.asarray(ref_bf),
                               rtol=1e-3, atol=1e-3)

    print("KERNEL_OK")
</pallas_src>

<mosaic_0001>
module attributes {stable_mosaic.version = 11 : i64} {
  func.func @_pool_fc_kernel(%arg0: i32, %arg1: memref<8x128x256xf32, #tpu.memory_space<vmem>>, %arg2: memref<1x128xf32, #tpu.memory_space<vmem>>, %arg3: memref<1x1xf32, #tpu.memory_space<smem>>, %arg4: memref<8x1xf32, #tpu.memory_space<vmem>>) attributes {dimension_semantics = [#tpu.dimension_semantics<parallel>], iteration_bounds = array<i64: 2>, scalar_prefetch = 0 : i64, scratch_operands = 0 : i64, tpu.core_type = #tpu.core_type<tc>, window_params = [{transform_indices = @transform_0, window_bounds = array<i64: 8, 128, 256>}, {pipeline_mode = #tpu.pipeline_mode<synchronous>, transform_indices = @transform_1, window_bounds = array<i64: 1, 128>}, {transform_indices = @transform_2, window_bounds = array<i64: 1, 1>}, {transform_indices = @transform_3, window_bounds = array<i64: 8, 1>}]} {
    %c0 = arith.constant 0 : index
    %c0_0 = arith.constant 0 : index
    %c0_1 = arith.constant 0 : index
    %0 = vector.load %arg1[%c0, %c0_0, %c0_1] : memref<8x128x256xf32, #tpu.memory_space<vmem>>, vector<8x128x256xf32>
    %cst = arith.constant dense<0.000000e+00> : vector<8x128xf32>
    %1 = vector.multi_reduction <add>, %0, %cst [2] : vector<8x128x256xf32> to vector<8x128xf32>
    %c0_2 = arith.constant 0 : index
    %c0_3 = arith.constant 0 : index
    %2 = vector.load %arg2[%c0_2, %c0_3] : memref<1x128xf32, #tpu.memory_space<vmem>>, vector<1x128xf32>
    %3 = vector.broadcast %2 : vector<1x128xf32> to vector<8x128xf32>
    %4 = arith.mulf %1, %3 : vector<8x128xf32>
    %cst_4 = arith.constant dense<0.000000e+00> : vector<8xf32>
    %5 = vector.multi_reduction <add>, %4, %cst_4 [1] : vector<8x128xf32> to vector<8xf32>
    %6 = vector.shape_cast %5 : vector<8xf32> to vector<8x1xf32>
    %c0_5 = arith.constant 0 : index
    %c0_6 = arith.constant 0 : index
    %7 = memref.load %arg3[%c0_5, %c0_6] : memref<1x1xf32, #tpu.memory_space<smem>>
    %8 = vector.broadcast %7 : f32 to vector<8x1xf32>
    %9 = arith.addf %6, %8 : vector<8x1xf32>
    %c0_7 = arith.constant 0 : index
    %c0_8 = arith.constant 0 : index
    %10 = vector.load %arg4[%c0_7, %c0_8] : memref<8x1xf32, #tpu.memory_space<vmem>>, vector<8x1xf32>
    tpu.vector_store %arg4[%c0_7, %c0_8], %9 {strides = array<i32>} : memref<8x1xf32, #tpu.memory_space<vmem>>, vector<8x1xf32>,
    return
  }
  func.func @transform_0(%arg0: i32) -> (i32, i32, i32) {
    %c0_i32 = arith.constant 0 : i32
    %c0_i32_0 = arith.constant 0 : i32
    %c0_i32_1 = arith.constant 0 : i32
    return %arg0, %c0_i32, %c0_i32_0 : i32, i32, i32
  }
  func.func @transform_1(%arg0: i32) -> (i32, i32) {
    %c0_i32 = arith.constant 0 : i32
    %c0_i32_0 = arith.constant 0 : i32
    %c0_i32_1 = arith.constant 0 : i32
    return %c0_i32, %c0_i32_0 : i32, i32
  }
  func.func @transform_2(%arg0: i32) -> (i32, i32) {
    %c0_i32 = arith.constant 0 : i32
    %c0_i32_0 = arith.constant 0 : i32
    %c0_i32_1 = arith.constant 0 : i32
    return %c0_i32, %c0_i32_0 : i32, i32
  }
  func.func @transform_3(%arg0: i32) -> (i32, i32) {
    %c0_i32 = arith.constant 0 : i32
    %c0_i32_0 = arith.constant 0 : i32
    return %arg0, %c0_i32 : i32, i32
  }
}

</mosaic_0001>

<bundles_post_ra>
// kernel: tpu_custom_call.1
= control target key start
LH: loop header
LB: loop body
LE: loop exit
PB: predicated region body
PF: predicated region fallthrough
CT: control target
= control target key end

     0   :  { %s3896_s0 = inlined_call_operand.hbm [shape: f32[16,128,256], index: 0, kind: input, shape index: {}]   ;;  %s3897_s1 = inlined_call_operand.hbm [shape: f32[1,128], index: 1, kind: input, shape index: {}]   ;;  %s3898_s2 = inlined_call_operand.<no memory space> [shape: f32[1,1], index: 2, kind: input, shape index: {}]   ;;  %s3899_s3 = inlined_call_operand.vmem [shape: f32[16,1], index: 3, kind: output, shape index: {}]  }
   0x1   :  { %8 = sst [smem:[#allocation2]] %s3898_s2 }
   0x2   :  { %9 = vsyncpa [#allocation4], 0 }
   0x3   :  { %11 = vsyncpa [#allocation4 + $0x1], 0 }
   0x4   :  { %12 = vsyncpa [#allocation6], 0  ;;  %s2525_s14 = smov 0   ;;  %s2527_s15 = smov 0  }
   0x5   :  { %s2529_s16 = smov 0   ;;  %s2531_s17 = smov 0  }
   0x6 LB: > { %s2544_s2 = sadd.s32 4294967295, %s2495_s17   ;;  %s2547_s18 = sadd.s32 1, %s2495_s17   ;;  %s2495_s17 = sphi %s2531_s17, %s4103_s17   ;;  %s2491_s16 = sphi %s2529_s16, %s4102_s16   ;;  %s2487_s15 = sphi %s2527_s15, %s4101_s15   ;;  %s2483_s14 = sphi %s2525_s14, %s4100_s14  }
   0x7   : > { %s22_s19 = ssub.s32 %s2495_s17, %s2547_s18  ;;  %s25_s20 = sadd.s32 1, %s2491_s16 }
   0x8   : > { %p23_p0 = scmp.eq.s32.totalorder %s22_s19, 0  ;;  %p32_p1 = scmp.ne.s32.totalorder %s2491_s16, %s2487_s15 }
   0x9   : > { %p33_p2 = scmp.eq.s32.totalorder %s2495_s17, 0  ;;  %p38_p3 = scmp.ne.s32.totalorder %s2487_s15, %s2483_s14 }
   0xa   : > { %s2557_s21 = scalar_select %p23_p0, %s2491_s16, %s25_s20  }
   0xb   : > { %p2559_p4 = por %p33_p2, %p32_p1  ;;  %p3900_p5 = scmp.eq.s32.totalorder %s2544_s2, 0 }
   0xc   : > { %p2332_p6 = scmp.ge.s32.totalorder %s2495_s17, 1  ;;  %p117_p7 = scmp.lt.s32.totalorder %s2495_s17, 3 }
   0xd   : > { %p2568_p8 = por %p3900_p5, %p38_p3  ;;  %s2497_s25 = smov [#allocation5]  }
   0xe   : > { %p2572_p9 = pnand %p2332_p6, %p117_p7  ;;  %s130_s26 = sshll.u32 %s2497_s25, 4  ;;  %s131_s26 = int_to_ptr.vmem [resolvable:$true] %s130_s26 }
   0xf   : > { %s3921_s23 = scalar_select %p2568_p8, 1, 0 }
  0x10   : > { %s3922_s24 = scalar_select %p2572_p9, 1, 0 }
  0x11   : > { %p2354_p10 = pneg %p2572_p9  ;;  %p2363_p11 = scmp.lt.s32.totalorder %s2495_s17, 2 }
  0x12   : > { %s144_s27 = sand.u32 1, %s2491_s16   ;;  %s2414_s4 = scalar_lea.vmem %s131_s26, 16 }
  0x13   : > { %p2582_p12 = pnand %p2354_p10, %p3900_p5  ;;  %p2588_p13 = pnand %p2363_p11, %p2559_p4 }
  0x14   : > { %s2335_s30 = sshll.u32 %s144_s27, 11  ;;  %p2415_p1 = scmp.ne.s32.totalorder %s131_s26, %s2414_s4 }
  0x15   : > { %p2405_p0 = pneg %p2582_p12  ;;  %s2421_s5 = scalar_lea.vmem %s131_s26, 32 }
  0x16   : > { %p2422_p6 = scmp.lt.s32.totalorder %s131_s26, %s131_s26  ;;  %p2423_p7 = scmp.lt.s32.totalorder %s2421_s5, %s2414_s4 }
  0x17   : > { %p2417_p2 = pnand %p2415_p1, %p2405_p0 }
  0x18   : > { %p2424_p10 = por %p2423_p7, %p2422_p6 }
  0x19   : > { %p2418_p3 = pneg %p2417_p2 }
  0x1b   : > { %p2425_p5 = pnand %p2424_p10, %p2418_p3 }
  0x1d   : > { %2428 = shalt.err (!%p2425_p5)
}
  0x1e   : > { %2357 = dma.hbm_to_vmem [thread:$0]  (!%p2582_p12), %s3897_s1, 16, %s131_s26, [#allocation6]  }
  0x1f   : > { %s2347_s8 = sshll.u32 %s2495_s17, 15  ;;  %s148_s12 = scalar_lea.vmem [#allocation3], %s2335_s30 }
  0x20   : > { %s2603_s11 = scalar_lea.hbm %s3896_s0, %s2347_s8  ;;  %s156_s13 = sshll.u32 %s148_s12, 4  ;;  %s2605_s13 = int_to_ptr.vmem [resolvable:$true] %s156_s13 }
  0x21   : > { %s2607_s14 = scalar_lea.sflag [#allocation4], %s144_s27  ;;  %s2429_s19 = scalar_lea.hbm %s2603_s11, 32768 }
  0x22   : > { %p2430_p4 = scmp.ne.s32.totalorder %s2603_s11, %s2429_s19  ;;  %p2431_p5 = pneg %p2588_p13 }
  0x23   : > { %s2434_s22 = scalar_lea.hbm %s3896_s0, 65536  ;;  %p2435_p0 = scmp.lt.s32.totalorder %s2603_s11, %s3896_s0 }
  0x24   : > { %p2432_p11 = pnand %p2431_p5, %p2430_p4  ;;  %p2436_p1 = scmp.lt.s32.totalorder %s2434_s22, %s2429_s19 }
  0x26   : > { %p2433_p12 = pneg %p2432_p11  ;;  %p2437_p2 = por %p2436_p1, %p2435_p0 }
  0x28   : > { %p2438_p3 = pnand %p2437_p2, %p2433_p12 }
  0x2a   : > { %2441 = shalt.err (!%p2438_p3)
}
  0x2b   : > { %s2442_s27 = scalar_lea.vmem %s2605_s13, 32768  ;;  %s2498_s28 = smov [#allocation3]  }
  0x2c   : > { %p2443_p6 = scmp.ne.s32.totalorder %s2605_s13, %s2442_s27  ;;  %s2447_s30 = sshll.u32 %s2498_s28, 4  ;;  %s2448_s30 = int_to_ptr.vmem [resolvable:$false] %s2447_s30 }
  0x2d   : > { %s2449_s4 = scalar_lea.vmem %s2448_s30, 65536  ;;  %p2450_p4 = scmp.lt.s32.totalorder %s2605_s13, %s2448_s30 }
  0x2e   : > { %p2445_p7 = pnand %p2443_p6, %p2431_p5  ;;  %p2451_p11 = scmp.lt.s32.totalorder %s2449_s4, %s2442_s27 }
  0x30   : > { %p2446_p10 = pneg %p2445_p7  ;;  %p2452_p8 = por %p2451_p11, %p2450_p4 }
  0x32   : > { %p2453_p9 = pnand %p2452_p8, %p2446_p10 }
  0x34   : > { %2456 = shalt.err (!%p2453_p9)
}
  0x35   : > { %s2499_s5 = smov 256   ;;  %s2500_s6 = smov 16  }
  0x36   : > { %2361 = dma.hbm_to_vmem [thread:$0]  (!%p2588_p13), %s2603_s11, 32768, %s2605_s13, %s2607_s14, %s2499_s5, %s2499_s5, %s2500_s6  }
  0x37   : > { %p3925_p5 = scmp.ne.s32.totalorder %s3922_s24, 0 }
  0x39   : > { %168 = sbr.rel (%p3925_p5) target bundleno = 993 (0x3e1), region = 32 }
  0x3e   : > { %s170_s7 = sand.u32 1, %s2487_s15   ;;  %p3926_p8 = scmp.ne.s32.totalorder %s3921_s23, 0 }
  0x3f   : > { %s2340_s8 = sshll.u32 %s170_s7, 11  ;;  %s171_s9 = scalar_lea.sflag [#allocation4], %s170_s7 }
  0x40   : > { %s2631_s10 = scalar_lea.vmem [#allocation3], %s2340_s8 }
  0x41   : > { %2474 = dma.done.wait (%p3926_p8), %s171_s9, 32768  }
  0x42   : > { %2476 = vsyncadd (%p3926_p8), %s171_s9, 4294934528  ;;  %p3927_p9 = scmp.eq.s32.totalorder %s2544_s2, 0 }
  0x44   : > { %2478 = dma.done.wait (%p3927_p9), [#allocation6], 16   ;;  %p3928_p13 = pmov %p3927_p9 }
  0x45   : > { %v209_v0 = vld [vmem:[%s2631_s10 + $0x20] sm:$0xff]  ;;  %v210_v1 = vld [vmem:[%s2631_s10 + $0x28] sm:$0xff]  ;;  %v211_v5 = vld [vmem:[%s2631_s10 + $0x30] sm:$0xff]  ;;  %vm1581_vm0 = vcmask 130112   ;;  %vm1588_vm1 = vcmask 195712   ;;  %vm1595_vm2 = vcmask 261312  }
  0x46   : > { %2480 = vsyncadd (%p3928_p13), [#allocation6], 4294967280  ;;  %v205_v2 = vld [vmem:[%s2631_s10] sm:$0xff]  ;;  %v467_v3 = vadd.f32 %v210_v1, %v209_v0  ;;  %v206_v4 = vld [vmem:[%s2631_s10 + $0x8] sm:$0xff]  ;;  %vm1602_vm3 = vcmask 326912   ;;  %vm1609_vm4 = vcmask 392512  }
  0x47   : > { %v212_v6 = vld [vmem:[%s2631_s10 + $0x38] sm:$0xff]  ;;  %v461_v7 = vadd.f32 %v206_v4, %v205_v2  ;;  %v207_v8 = vld [vmem:[%s2631_s10 + $0x10] sm:$0xff]  ;;  %v213_v14 = vld [vmem:[%s2631_s10 + $0x40] sm:$0xff]  ;;  %vm1616_vm5 = vcmask 458112   ;;  %vm1623_vm6 = vcmask 523712   ;;  %vm1630_vm7 = vcmask 589312  }
  0x48   : > { %v208_v9 = vld [vmem:[%s2631_s10 + $0x18] sm:$0xff]  ;;  %468 = vadd.xlane.f32.xlu1 %v467_v3  ;;  %v470_v10 = vadd.f32 %v212_v6, %v211_v5  ;;  %v215_v12 = vld [vmem:[%s2631_s10 + $0x50] sm:$0xff]  ;;  %v214_v15 = vld [vmem:[%s2631_s10 + $0x48] sm:$0xff]  ;;  %vm1637_vm8 = vcmask 654912   ;;  %vm1644_vm9 = vcmask 720512   ;;  %vm1651_vm10 = vcmask 786112  }
  0x49   : > { %462 = vadd.xlane.f32.xlu0 %v461_v7  ;;  %v464_v11 = vadd.f32 %v208_v9, %v207_v8  ;;  %v216_v13 = vld [vmem:[%s2631_s10 + $0x58] sm:$0xff]  ;;  %v473_v17 = vadd.f32 %v214_v15, %v213_v14  ;;  %v219_v18 = vld [vmem:[%s2631_s10 + $0x70] sm:$0xff]  ;;  %v217_v20 = vld [vmem:[%s2631_s10 + $0x60] sm:$0xff]  ;;  %vm3919_vm11 = vcmask 851712   ;;  %vm1665_vm12 = vcmask 917312   ;;  %p201_p12 = scmp.lt.s32.totalorder %s2544_s2, 1 }
  0x4a   : > { %v476_v16 = vadd.f32 %v216_v13, %v215_v12  ;;  %v220_v19 = vld [vmem:[%s2631_s10 + $0x78] sm:$0xff]  ;;  %v218_v21 = vld [vmem:[%s2631_s10 + $0x68] sm:$0xff]  ;;  %v223_v24 = vld [vmem:[%s2631_s10 + $0x90] sm:$0xff]  ;;  %vm1672_vm13 = vcmask 982912   ;;  %vm1679_vm14 = vcmask 1048512   ;;  %vm2234_vm15 = vcmask 1041409  }
  0x4b   : > { %v482_v22 = vadd.f32 %v220_v19, %v219_v18  ;;  %v479_v23 = vadd.f32 %v218_v21, %v217_v20  ;;  %v224_v25 = vld [vmem:[%s2631_s10 + $0x98] sm:$0xff]  ;;  %v221_v26 = vld [vmem:[%s2631_s10 + $0x80] sm:$0xff]  ;;  %v222_v27 = vld [vmem:[%s2631_s10 + $0x88] sm:$0xff]  ;;  %s2251_s23 = sld [smem:[#allocation2]]  ;;  %s4105_s2 = smov (!%p201_p12, %s2544_s2), 1 }
  0x4c   : > { %471 = vadd.xlane.f32.xlu1 %v470_v10  ;;  %v488_v28 = vadd.f32 %v224_v25, %v223_v24  ;;  %v485_v29 = vadd.f32 %v222_v27, %v221_v26  ;;  %v227_v30 = vld [vmem:[%s2631_s10 + $0xb0] sm:$0xff]  ;;  %v228_v31 = vld [vmem:[%s2631_s10 + $0xb8] sm:$0xff]  ;;  %v225_v32 = vld [vmem:[%s2631_s10 + $0xa0] sm:$0xff]  ;;  %s2342_s24 = sshll.u32 %s4105_s2, 3 }
  0x4d   : > { %465 = vadd.xlane.f32.xlu0 %v464_v11  ;;  %v226_v33 = vld [vmem:[%s2631_s10 + $0xa8] sm:$0xff]  ;;  %v494_v34 = vadd.f32 %v228_v31, %v227_v30  ;;  %v231_v36 = vld [vmem:[%s2631_s10 + $0xd0] sm:$0xff]  ;;  %v232_v37 = vld [vmem:[%s2631_s10 + $0xd8] sm:$0xff]  ;;  %s204_s12 = scalar_lea.vmem %s3899_s3, %s2342_s24 }
  0x4e   : > { %v491_v35 = vadd.f32 %v226_v33, %v225_v32  ;;  %v229_v38 = vld [vmem:[%s2631_s10 + $0xc0] sm:$0xff]  ;;  %v230_v39 = vld [vmem:[%s2631_s10 + $0xc8] sm:$0xff]  ;;  %v500_v40 = vadd.f32 %v232_v37, %v231_v36  ;;  %v235_v42 = vld [vmem:[%s2631_s10 + $0xf0] sm:$0xff] }
  0x4f   : > { %v497_v41 = vadd.f32 %v230_v39, %v229_v38  ;;  %v236_v43 = vld [vmem:[%s2631_s10 + $0xf8] sm:$0xff]  ;;  %v233_v44 = vld [vmem:[%s2631_s10 + $0xe0] sm:$0xff]  ;;  %v234_v45 = vld [vmem:[%s2631_s10 + $0xe8] sm:$0xff] }
  0x50   : > { %477 = vadd.xlane.f32.xlu1 %v476_v16  ;;  %v506_v46 = vadd.f32 %v236_v43, %v235_v42  ;;  %v503_v47 = vadd.f32 %v234_v45, %v233_v44  ;;  %v239_v48 = vld [vmem:[%s2631_s10 + $0x110] sm:$0xff]  ;;  %v240_v49 = vld [vmem:[%s2631_s10 + $0x118] sm:$0xff]  ;;  %v237_v50 = vld [vmem:[%s2631_s10 + $0x100] sm:$0xff] }
  0x51   : > { %474 = vadd.xlane.f32.xlu0 %v473_v17  ;;  %v238_v51 = vld [vmem:[%s2631_s10 + $0x108] sm:$0xff]  ;;  %v512_v52 = vadd.f32 %v240_v49, %v239_v48  ;;  %v243_v54 = vld [vmem:[%s2631_s10 + $0x130] sm:$0xff]  ;;  %v244_v55 = vld [vmem:[%s2631_s10 + $0x138] sm:$0xff] }
  0x52   : > { %v509_v53 = vadd.f32 %v238_v51, %v237_v50  ;;  %v241_v56 = vld [vmem:[%s2631_s10 + $0x120] sm:$0xff]  ;;  %v242_v57 = vld [vmem:[%s2631_s10 + $0x128] sm:$0xff]  ;;  %v518_v58 = vadd.f32 %v244_v55, %v243_v54  ;;  %v247_v60 = vld [vmem:[%s2631_s10 + $0x150] sm:$0xff] }
  0x53   : > { %v515_v59 = vadd.f32 %v242_v57, %v241_v56  ;;  %v248_v61 = vld [vmem:[%s2631_s10 + $0x158] sm:$0xff]  ;;  %v245_v62 = vld [vmem:[%s2631_s10 + $0x140] sm:$0xff]  ;;  %v246_v63 = vld [vmem:[%s2631_s10 + $0x148] sm:$0xff] }
  0x54   : > { %483 = vadd.xlane.f32.xlu1 %v482_v22  ;;  %v524_v0 = vadd.f32 %v248_v61, %v247_v60  ;;  %v521_v1 = vadd.f32 %v246_v63, %v245_v62  ;;  %v251_v2 = vld [vmem:[%s2631_s10 + $0x170] sm:$0xff]  ;;  %v252_v3 = vld [vmem:[%s2631_s10 + $0x178] sm:$0xff]  ;;  %v249_v4 = vld [vmem:[%s2631_s10 + $0x160] sm:$0xff] }
  0x55   : > { %480 = vadd.xlane.f32.xlu0 %v479_v23  ;;  %v250_v5 = vld [vmem:[%s2631_s10 + $0x168] sm:$0xff]  ;;  %v530_v6 = vadd.f32 %v252_v3, %v251_v2  ;;  %v255_v8 = vld [vmem:[%s2631_s10 + $0x190] sm:$0xff]  ;;  %v256_v9 = vld [vmem:[%s2631_s10 + $0x198] sm:$0xff] }
  0x56   : > { %v527_v7 = vadd.f32 %v250_v5, %v249_v4  ;;  %v253_v10 = vld [vmem:[%s2631_s10 + $0x180] sm:$0xff]  ;;  %v254_v11 = vld [vmem:[%s2631_s10 + $0x188] sm:$0xff]  ;;  %v536_v12 = vadd.f32 %v256_v9, %v255_v8  ;;  %v259_v14 = vld [vmem:[%s2631_s10 + $0x1b0] sm:$0xff] }
  0x57   : > { %v533_v13 = vadd.f32 %v254_v11, %v253_v10  ;;  %v260_v15 = vld [vmem:[%s2631_s10 + $0x1b8] sm:$0xff]  ;;  %v257_v16 = vld [vmem:[%s2631_s10 + $0x1a0] sm:$0xff]  ;;  %v258_v17 = vld [vmem:[%s2631_s10 + $0x1a8] sm:$0xff] }
  0x58   : > { %489 = vadd.xlane.f32.xlu1 %v488_v28  ;;  %v542_v18 = vadd.f32 %v260_v15, %v259_v14  ;;  %v539_v19 = vadd.f32 %v258_v17, %v257_v16  ;;  %v263_v20 = vld [vmem:[%s2631_s10 + $0x1d0] sm:$0xff]  ;;  %v264_v21 = vld [vmem:[%s2631_s10 + $0x1d8] sm:$0xff]  ;;  %v261_v22 = vld [vmem:[%s2631_s10 + $0x1c0] sm:$0xff] }
  0x59   : > { %486 = vadd.xlane.f32.xlu0 %v485_v29  ;;  %v262_v23 = vld [vmem:[%s2631_s10 + $0x1c8] sm:$0xff]  ;;  %v548_v24 = vadd.f32 %v264_v21, %v263_v20  ;;  %v267_v26 = vld [vmem:[%s2631_s10 + $0x1f0] sm:$0xff]  ;;  %v268_v27 = vld [vmem:[%s2631_s10 + $0x1f8] sm:$0xff] }
  0x5a   : > { %v545_v25 = vadd.f32 %v262_v23, %v261_v22  ;;  %v265_v28 = vld [vmem:[%s2631_s10 + $0x1e0] sm:$0xff]  ;;  %v266_v29 = vld [vmem:[%s2631_s10 + $0x1e8] sm:$0xff]  ;;  %v554_v30 = vadd.f32 %v268_v27, %v267_v26  ;;  %v271_v32 = vld [vmem:[%s2631_s10 + $0x210] sm:$0xff] }
  0x5b   : > { %v551_v31 = vadd.f32 %v266_v29, %v265_v28  ;;  %v272_v33 = vld [vmem:[%s2631_s10 + $0x218] sm:$0xff]  ;;  %v275_v38 = vld [vmem:[%s2631_s10 + $0x230] sm:$0xff] }
  0x5c   : > { %495 = vadd.xlane.f32.xlu1 %v494_v34  ;;  %v269_v34 = vld [vmem:[%s2631_s10 + $0x200] sm:$0xff]  ;;  %v560_v36 = vadd.f32 %v272_v33, %v271_v32  ;;  %v276_v39 = vld [vmem:[%s2631_s10 + $0x238] sm:$0xff]  ;;  %v279_v44 = vld [vmem:[%s2631_s10 + $0x250] sm:$0xff] }
  0x5d   : > { %492 = vadd.xlane.f32.xlu0 %v491_v35  ;;  %v270_v35 = vld [vmem:[%s2631_s10 + $0x208] sm:$0xff]  ;;  %v566_v42 = vadd.f32 %v276_v39, %v275_v38  ;;  %v280_v45 = vld [vmem:[%s2631_s10 + $0x258] sm:$0xff]  ;;  %v283_v50 = vld [vmem:[%s2631_s10 + $0x270] sm:$0xff] }
  0x5e   : > { %v557_v37 = vadd.f32 %v270_v35, %v269_v34  ;;  %v572_v48 = vadd.f32 %v280_v45, %v279_v44  ;;  %v284_v51 = vld [vmem:[%s2631_s10 + $0x278] sm:$0xff]  ;;  %v287_v56 = vld [vmem:[%s2631_s10 + $0x290] sm:$0xff] }
  0x5f   : > { %v578_v54 = vadd.f32 %v284_v51, %v283_v50  ;;  %v288_v57 = vld [vmem:[%s2631_s10 + $0x298] sm:$0xff]  ;;  %v291_v62 = vld [vmem:[%s2631_s10 + $0x2b0] sm:$0xff] }
  0x60   : > { %501 = vadd.xlane.f32.xlu1 %v500_v40  ;;  %v273_v40 = vld [vmem:[%s2631_s10 + $0x220] sm:$0xff]  ;;  %v584_v60 = vadd.f32 %v288_v57, %v287_v56  ;;  %v292_v63 = vld [vmem:[%s2631_s10 + $0x2b8] sm:$0xff]  ;;  %v295_v4 = vld [vmem:[%s2631_s10 + $0x2d0] sm:$0xff] }
  0x61   : > { %498 = vadd.xlane.f32.xlu0 %v497_v41  ;;  %v274_v41 = vld [vmem:[%s2631_s10 + $0x228] sm:$0xff]  ;;  %v590_v2 = vadd.f32 %v292_v63, %v291_v62  ;;  %v296_v5 = vld [vmem:[%s2631_s10 + $0x2d8] sm:$0xff]  ;;  %v299_v10 = vld [vmem:[%s2631_s10 + $0x2f0] sm:$0xff] }
  0x62   : > { %v563_v43 = vadd.f32 %v274_v41, %v273_v40  ;;  %v596_v8 = vadd.f32 %v296_v5, %v295_v4  ;;  %v300_v11 = vld [vmem:[%s2631_s10 + $0x2f8] sm:$0xff]  ;;  %v303_v16 = vld [vmem:[%s2631_s10 + $0x310] sm:$0xff] }
  0x63   : > { %v602_v14 = vadd.f32 %v300_v11, %v299_v10  ;;  %v304_v17 = vld [vmem:[%s2631_s10 + $0x318] sm:$0xff]  ;;  %v307_v22 = vld [vmem:[%s2631_s10 + $0x330] sm:$0xff] }
  0x64   : > { %507 = vadd.xlane.f32.xlu1 %v506_v46  ;;  %v277_v46 = vld [vmem:[%s2631_s10 + $0x240] sm:$0xff]  ;;  %v608_v20 = vadd.f32 %v304_v17, %v303_v16  ;;  %v308_v23 = vld [vmem:[%s2631_s10 + $0x338] sm:$0xff]  ;;  %v311_v28 = vld [vmem:[%s2631_s10 + $0x350] sm:$0xff] }
  0x65   : > { %504 = vadd.xlane.f32.xlu0 %v503_v47  ;;  %v278_v47 = vld [vmem:[%s2631_s10 + $0x248] sm:$0xff]  ;;  %v614_v26 = vadd.f32 %v308_v23, %v307_v22  ;;  %v312_v29 = vld [vmem:[%s2631_s10 + $0x358] sm:$0xff]  ;;  %v315_v34 = vld [vmem:[%s2631_s10 + $0x370] sm:$0xff] }
  0x66   : > { %v569_v49 = vadd.f32 %v278_v47, %v277_v46  ;;  %v620_v32 = vadd.f32 %v312_v29, %v311_v28  ;;  %v316_v35 = vld [vmem:[%s2631_s10 + $0x378] sm:$0xff]  ;;  %v319_v40 = vld [vmem:[%s2631_s10 + $0x390] sm:$0xff]  ;;  %v349_v28 = vld [vmem:[%s2631_s10 + $0x480] sm:$0xff] }
  0x67   : > { %v626_v38 = vadd.f32 %v316_v35, %v315_v34  ;;  %v320_v41 = vld [vmem:[%s2631_s10 + $0x398] sm:$0xff]  ;;  %v323_v46 = vld [vmem:[%s2631_s10 + $0x3b0] sm:$0xff]  ;;  %v350_v29 = vld [vmem:[%s2631_s10 + $0x488] sm:$0xff] }
  0x68   : > { %513 = vadd.xlane.f32.xlu1 %v512_v52  ;;  %v281_v52 = vld [vmem:[%s2631_s10 + $0x260] sm:$0xff]  ;;  %v632_v44 = vadd.f32 %v320_v41, %v319_v40  ;;  %v324_v47 = vld [vmem:[%s2631_s10 + $0x3b8] sm:$0xff]  ;;  %v359_v41 = vld [vmem:[%s2631_s10 + $0x4d0] sm:$0xff] }
  0x69   : > { %510 = vadd.xlane.f32.xlu0 %v509_v53  ;;  %v282_v53 = vld [vmem:[%s2631_s10 + $0x268] sm:$0xff]  ;;  %v638_v50 = vadd.f32 %v324_v47, %v323_v46  ;;  %v356_v34 = vld [vmem:[%s2631_s10 + $0x4b8] sm:$0xff] }
  0x6a   : > { %v575_v55 = vadd.f32 %v282_v53, %v281_v52  ;;  %v327_v52 = vld [vmem:[%s2631_s10 + $0x3d0] sm:$0xff]  ;;  %v328_v53 = vld [vmem:[%s2631_s10 + $0x3d8] sm:$0xff] }
  0x6b   : > { %v644_v56 = vadd.f32 %v328_v53, %v327_v52  ;;  %v361_v52 = vld [vmem:[%s2631_s10 + $0x4e0] sm:$0xff]  ;;  %v362_v53 = vld [vmem:[%s2631_s10 + $0x4e8] sm:$0xff] }
  0x6c   : > { %519 = vadd.xlane.f32.xlu1 %v518_v58  ;;  %v285_v58 = vld [vmem:[%s2631_s10 + $0x280] sm:$0xff] }
  0x6d   : > { %516 = vadd.xlane.f32.xlu0 %v515_v59  ;;  %v286_v59 = vld [vmem:[%s2631_s10 + $0x288] sm:$0xff] }
  0x6e   : > { %v581_v61 = vadd.f32 %v286_v59, %v285_v58  ;;  %v331_v58 = vld [vmem:[%s2631_s10 + $0x3f0] sm:$0xff]  ;;  %v332_v59 = vld [vmem:[%s2631_s10 + $0x3f8] sm:$0xff] }
  0x6f   : > { %v650_v62 = vadd.f32 %v332_v59, %v331_v58  ;;  %v368_v58 = vld [vmem:[%s2631_s10 + $0x518] sm:$0xff] }
  0x70   : > { %525 = vadd.xlane.f32.xlu1 %v524_v0  ;;  %v289_v0 = vld [vmem:[%s2631_s10 + $0x2a0] sm:$0xff] }
  0x71   : > { %522 = vadd.xlane.f32.xlu0 %v521_v1  ;;  %v290_v1 = vld [vmem:[%s2631_s10 + $0x2a8] sm:$0xff] }
  0x72   : > { %v587_v3 = vadd.f32 %v290_v1, %v289_v0  ;;  %v335_v0 = vld [vmem:[%s2631_s10 + $0x410] sm:$0xff]  ;;  %v336_v1 = vld [vmem:[%s2631_s10 + $0x418] sm:$0xff] }
  0x73   : > { %v656_v4 = vadd.f32 %v336_v1, %v335_v0  ;;  %v371_v1 = vld [vmem:[%s2631_s10 + $0x530] sm:$0xff] }
  0x74   : > { %531 = vadd.xlane.f32.xlu1 %v530_v6  ;;  %v293_v6 = vld [vmem:[%s2631_s10 + $0x2c0] sm:$0xff] }
  0x75   : > { %528 = vadd.xlane.f32.xlu0 %v527_v7  ;;  %v294_v7 = vld [vmem:[%s2631_s10 + $0x2c8] sm:$0xff] }
  0x76   : > { %v593_v9 = vadd.f32 %v294_v7, %v293_v6  ;;  %v339_v6 = vld [vmem:[%s2631_s10 + $0x430] sm:$0xff]  ;;  %v340_v7 = vld [vmem:[%s2631_s10 + $0x438] sm:$0xff] }
  0x77   : > { %v662_v10 = vadd.f32 %v340_v7, %v339_v6 }
  0x78   : > { %537 = vadd.xlane.f32.xlu1 %v536_v12  ;;  %v297_v12 = vld [vmem:[%s2631_s10 + $0x2e0] sm:$0xff] }
  0x79   : > { %534 = vadd.xlane.f32.xlu0 %v533_v13  ;;  %v298_v13 = vld [vmem:[%s2631_s10 + $0x2e8] sm:$0xff] }
  0x7a   : > { %v599_v15 = vadd.f32 %v298_v13, %v297_v12  ;;  %v343_v12 = vld [vmem:[%s2631_s10 + $0x450] sm:$0xff]  ;;  %v344_v13 = vld [vmem:[%s2631_s10 + $0x458] sm:$0xff] }
  0x7b   : > { %v668_v16 = vadd.f32 %v344_v13, %v343_v12  ;;  %v373_v12 = vld [vmem:[%s2631_s10 + $0x540] sm:$0xff]  ;;  %v374_v13 = vld [vmem:[%s2631_s10 + $0x548] sm:$0xff] }
  0x7c   : > { %543 = vadd.xlane.f32.xlu1 %v542_v18  ;;  %v301_v18 = vld [vmem:[%s2631_s10 + $0x300] sm:$0xff] }
  0x7d   : > { %540 = vadd.xlane.f32.xlu0 %v539_v19  ;;  %v302_v19 = vld [vmem:[%s2631_s10 + $0x308] sm:$0xff] }
  0x7e   : > { %v605_v21 = vadd.f32 %v302_v19, %v301_v18  ;;  %v347_v18 = vld [vmem:[%s2631_s10 + $0x470] sm:$0xff]  ;;  %v348_v19 = vld [vmem:[%s2631_s10 + $0x478] sm:$0xff] }
  0x7f   : > { %v674_v22 = vadd.f32 %v348_v19, %v347_v18  ;;  %v380_v18 = vld [vmem:[%s2631_s10 + $0x578] sm:$0xff] }
  0x80   : > { %549 = vadd.xlane.f32.xlu1 %v548_v24  ;;  %v305_v24 = vld [vmem:[%s2631_s10 + $0x320] sm:$0xff] }
  0x81   : > { %546 = vadd.xlane.f32.xlu0 %v545_v25  ;;  %v306_v25 = vld [vmem:[%s2631_s10 + $0x328] sm:$0xff] }
  0x82   : > { %v611_v27 = vadd.f32 %v306_v25, %v305_v24  ;;  %v351_v25 = vld [vmem:[%s2631_s10 + $0x490] sm:$0xff] }
  0x84   : > { %555 = vadd.xlane.f32.xlu1 %v554_v30  ;;  %v309_v30 = vld [vmem:[%s2631_s10 + $0x340] sm:$0xff] }
  0x85   : > { %552 = vadd.xlane.f32.xlu0 %v551_v31  ;;  %v310_v31 = vld [vmem:[%s2631_s10 + $0x348] sm:$0xff] }
  0x86   : > { %v617_v33 = vadd.f32 %v310_v31, %v309_v30 }
  0x88   : > { %561 = vadd.xlane.f32.xlu1 %v560_v36  ;;  %v313_v36 = vld [vmem:[%s2631_s10 + $0x360] sm:$0xff] }
  0x89   : > { %558 = vadd.xlane.f32.xlu0 %v557_v37  ;;  %v314_v37 = vld [vmem:[%s2631_s10 + $0x368] sm:$0xff] }
  0x8a   : > { %v623_v39 = vadd.f32 %v314_v37, %v313_v36  ;;  %v353_v36 = vld [vmem:[%s2631_s10 + $0x4a0] sm:$0xff]  ;;  %v354_v37 = vld [vmem:[%s2631_s10 + $0x4a8] sm:$0xff] }
  0x8b   : > { %v683_v40 = vadd.f32 %v354_v37, %v353_v36  ;;  %v387_v37 = vld [vmem:[%s2631_s10 + $0x5b0] sm:$0xff] }
  0x8c   : > { %567 = vadd.xlane.f32.xlu1 %v566_v42  ;;  %v317_v42 = vld [vmem:[%s2631_s10 + $0x380] sm:$0xff] }
  0x8d   : > { %564 = vadd.xlane.f32.xlu0 %v563_v43  ;;  %v318_v43 = vld [vmem:[%s2631_s10 + $0x388] sm:$0xff] }
  0x8e   : > { %v629_v45 = vadd.f32 %v318_v43, %v317_v42  ;;  %v360_v42 = vld [vmem:[%s2631_s10 + $0x4d8] sm:$0xff] }
  0x8f   : > { %v692_v46 = vadd.f32 %v360_v42, %v359_v41  ;;  %v385_v41 = vld [vmem:[%s2631_s10 + $0x5a0] sm:$0xff]  ;;  %v386_v42 = vld [vmem:[%s2631_s10 + $0x5a8] sm:$0xff] }
  0x90   : > { %573 = vadd.xlane.f32.xlu1 %v572_v48  ;;  %v321_v48 = vld [vmem:[%s2631_s10 + $0x3a0] sm:$0xff] }
  0x91   : > { %570 = vadd.xlane.f32.xlu0 %v569_v49  ;;  %v322_v49 = vld [vmem:[%s2631_s10 + $0x3a8] sm:$0xff] }
  0x92   : > { %v635_v51 = vadd.f32 %v322_v49, %v321_v48  ;;  %v363_v49 = vld [vmem:[%s2631_s10 + $0x4f0] sm:$0xff] }
  0x94   : > { %579 = vadd.xlane.f32.xlu1 %v578_v54  ;;  %v325_v54 = vld [vmem:[%s2631_s10 + $0x3c0] sm:$0xff] }
  0x95   : > { %576 = vadd.xlane.f32.xlu0 %v575_v55  ;;  %v326_v55 = vld [vmem:[%s2631_s10 + $0x3c8] sm:$0xff] }
  0x96   : > { %v641_v57 = vadd.f32 %v326_v55, %v325_v54 }
  0x98   : > { %585 = vadd.xlane.f32.xlu1 %v584_v60  ;;  %v329_v60 = vld [vmem:[%s2631_s10 + $0x3e0] sm:$0xff] }
  0x99   : > { %582 = vadd.xlane.f32.xlu0 %v581_v61  ;;  %v330_v61 = vld [vmem:[%s2631_s10 + $0x3e8] sm:$0xff] }
  0x9a   : > { %v647_v63 = vadd.f32 %v330_v61, %v329_v60  ;;  %v365_v60 = vld [vmem:[%s2631_s10 + $0x500] sm:$0xff]  ;;  %v366_v61 = vld [vmem:[%s2631_s10 + $0x508] sm:$0xff] }
  0x9b   : > { %v701_v0 = vadd.f32 %v366_v61, %v365_v60  ;;  %v396_v60 = vld [vmem:[%s2631_s10 + $0x5f8] sm:$0xff] }
  0x9c   : > { %591 = vadd.xlane.f32.xlu1 %v590_v2  ;;  %v333_v2 = vld [vmem:[%s2631_s10 + $0x400] sm:$0xff] }
  0x9d   : > { %588 = vadd.xlane.f32.xlu0 %v587_v3  ;;  %v334_v3 = vld [vmem:[%s2631_s10 + $0x408] sm:$0xff] }
  0x9e   : > { %v653_v5 = vadd.f32 %v334_v3, %v333_v2  ;;  %v372_v2 = vld [vmem:[%s2631_s10 + $0x538] sm:$0xff] }
  0x9f   : > { %v710_v6 = vadd.f32 %v372_v2, %v371_v1 }
  0xa0   : > { %597 = vadd.xlane.f32.xlu1 %v596_v8  ;;  %v337_v8 = vld [vmem:[%s2631_s10 + $0x420] sm:$0xff] }
  0xa1   : > { %594 = vadd.xlane.f32.xlu0 %v593_v9  ;;  %v338_v9 = vld [vmem:[%s2631_s10 + $0x428] sm:$0xff] }
  0xa2   : > { %v659_v11 = vadd.f32 %v338_v9, %v337_v8  ;;  %v375_v9 = vld [vmem:[%s2631_s10 + $0x550] sm:$0xff] }
  0xa4   : > { %603 = vadd.xlane.f32.xlu1 %v602_v14  ;;  %v341_v14 = vld [vmem:[%s2631_s10 + $0x440] sm:$0xff] }
  0xa5   : > { %600 = vadd.xlane.f32.xlu0 %v599_v15  ;;  %v342_v15 = vld [vmem:[%s2631_s10 + $0x448] sm:$0xff] }
  0xa6   : > { %v665_v17 = vadd.f32 %v342_v15, %v341_v14 }
  0xa8   : > { %609 = vadd.xlane.f32.xlu1 %v608_v20  ;;  %v345_v20 = vld [vmem:[%s2631_s10 + $0x460] sm:$0xff] }
  0xa9   : > { %606 = vadd.xlane.f32.xlu0 %v605_v21  ;;  %v346_v21 = vld [vmem:[%s2631_s10 + $0x468] sm:$0xff] }
  0xaa   : > { %v671_v24 = vadd.f32 %v346_v21, %v345_v20  ;;  %v377_v20 = vld [vmem:[%s2631_s10 + $0x560] sm:$0xff]  ;;  %v378_v21 = vld [vmem:[%s2631_s10 + $0x568] sm:$0xff] }
  0xac   : > { %615 = vadd.xlane.f32.xlu1 %v614_v26  ;;  %v352_v26 = vld [vmem:[%s2631_s10 + $0x498] sm:$0xff] }
  0xad   : > { %612 = vadd.xlane.f32.xlu0 %v611_v27  ;;  %v680_v30 = vadd.f32 %v352_v26, %v351_v25  ;;  %v719_v25 = vadd.f32 %v378_v21, %v377_v20  ;;  %v383_v26 = vld [vmem:[%s2631_s10 + $0x590] sm:$0xff]  ;;  %v401_v20 = vld [vmem:[%s2631_s10 + $0x620] sm:$0xff]  ;;  %v402_v21 = vld [vmem:[%s2631_s10 + $0x628] sm:$0xff] }
  0xb0   : > { %621 = vadd.xlane.f32.xlu1 %v620_v32  ;;  %v677_v32 = vadd.f32 %v350_v29, %v349_v28  ;;  %v384_v28 = vld [vmem:[%s2631_s10 + $0x598] sm:$0xff] }
  0xb1   : > { %618 = vadd.xlane.f32.xlu0 %v617_v33  ;;  %v355_v33 = vld [vmem:[%s2631_s10 + $0x4b0] sm:$0xff] }
  0xb4   : > { %627 = vadd.xlane.f32.xlu1 %v626_v38  ;;  %v686_v38 = vadd.f32 %v356_v34, %v355_v33  ;;  %v728_v33 = vadd.f32 %v384_v28, %v383_v26  ;;  %v755_v26 = vadd.f32 %v402_v21, %v401_v20  ;;  %v407_v28 = vld [vmem:[%s2631_s10 + $0x650] sm:$0xff] }
  0xb5   : > { %624 = vadd.xlane.f32.xlu0 %v623_v39  ;;  %v423_v21 = vld [vmem:[%s2631_s10 + $0x6d0] sm:$0xff] }
  0xb8   : > { %633 = vadd.xlane.f32.xlu1 %v632_v44  ;;  %v357_v44 = vld [vmem:[%s2631_s10 + $0x4c0] sm:$0xff] }
  0xb9   : > { %630 = vadd.xlane.f32.xlu0 %v629_v45  ;;  %v358_v45 = vld [vmem:[%s2631_s10 + $0x4c8] sm:$0xff] }
  0xba   : > { %v689_v48 = vadd.f32 %v358_v45, %v357_v44 }
  0xbc   : > { %639 = vadd.xlane.f32.xlu1 %v638_v50  ;;  %v364_v50 = vld [vmem:[%s2631_s10 + $0x4f8] sm:$0xff] }
  0xbd   : > { %636 = vadd.xlane.f32.xlu0 %v635_v51  ;;  %v698_v54 = vadd.f32 %v364_v50, %v363_v49  ;;  %v392_v49 = vld [vmem:[%s2631_s10 + $0x5d8] sm:$0xff] }
  0xc0   : > { %645 = vadd.xlane.f32.xlu1 %v644_v56  ;;  %v695_v56 = vadd.f32 %v362_v53, %v361_v52  ;;  %v389_v52 = vld [vmem:[%s2631_s10 + $0x5c0] sm:$0xff]  ;;  %v390_v53 = vld [vmem:[%s2631_s10 + $0x5c8] sm:$0xff] }
  0xc1   : > { %642 = vadd.xlane.f32.xlu0 %v641_v57  ;;  %v367_v57 = vld [vmem:[%s2631_s10 + $0x510] sm:$0xff] }
  0xc4   : > { %651 = vadd.xlane.f32.xlu1 %v650_v62  ;;  %v704_v62 = vadd.f32 %v368_v58, %v367_v57  ;;  %v737_v57 = vadd.f32 %v390_v53, %v389_v52  ;;  %v395_v58 = vld [vmem:[%s2631_s10 + $0x5f0] sm:$0xff] }
  0xc5   : > { %648 = vadd.xlane.f32.xlu0 %v647_v63  ;;  %v746_v1 = vadd.f32 %v396_v60, %v395_v58  ;;  %v416_v58 = vld [vmem:[%s2631_s10 + $0x698] sm:$0xff] }
  0xc8   : > { %657 = vadd.xlane.f32.xlu1 %v656_v4  ;;  %v369_v4 = vld [vmem:[%s2631_s10 + $0x520] sm:$0xff] }
  0xc9   : > { %654 = vadd.xlane.f32.xlu0 %v653_v5  ;;  %v370_v5 = vld [vmem:[%s2631_s10 + $0x528] sm:$0xff] }
  0xca   : > { %v707_v8 = vadd.f32 %v370_v5, %v369_v4  ;;  %v399_v5 = vld [vmem:[%s2631_s10 + $0x610] sm:$0xff] }
  0xcc   : > { %663 = vadd.xlane.f32.xlu1 %v662_v10  ;;  %v376_v10 = vld [vmem:[%s2631_s10 + $0x558] sm:$0xff] }
  0xcd   : > { %660 = vadd.xlane.f32.xlu0 %v659_v11  ;;  %v716_v14 = vadd.f32 %v376_v10, %v375_v9  ;;  %v397_v9 = vld [vmem:[%s2631_s10 + $0x600] sm:$0xff]  ;;  %v398_v10 = vld [vmem:[%s2631_s10 + $0x608] sm:$0xff] }
  0xd0   : > { %669 = vadd.xlane.f32.xlu1 %v668_v16  ;;  %v713_v16 = vadd.f32 %v374_v13, %v373_v12 }
  0xd1   : > { %666 = vadd.xlane.f32.xlu0 %v665_v17  ;;  %v2785_v23 = vpop.xlane.xlu1 %468  ;;  %v379_v17 = vld [vmem:[%s2631_s10 + $0x570] sm:$0xff] }
  0xd2   : > { %v2789_v27 = vpop.xlane.xlu0 %462 }
  0xd4   : > { %675 = vadd.xlane.f32.xlu1 %v674_v22  ;;  %v722_v22 = vadd.f32 %v380_v18, %v379_v17  ;;  %v404_v17 = vld [vmem:[%s2631_s10 + $0x638] sm:$0xff] }
  0xd5   : > { %672 = vadd.xlane.f32.xlu0 %v671_v24  ;;  %v2793_v31 = vpop.xlane.xlu1 %471 }
  0xd6   : > { %v2797_v35 = vpop.xlane.xlu0 %465 }
  0xd8   : > { %681 = vadd.xlane.f32.xlu1 %v680_v30  ;;  %v381_v30 = vld [vmem:[%s2631_s10 + $0x580] sm:$0xff] }
  0xd9   : > { %678 = vadd.xlane.f32.xlu0 %v677_v32  ;;  %v2801_v39 = vpop.xlane.xlu1 %477  ;;  %v382_v32 = vld [vmem:[%s2631_s10 + $0x588] sm:$0xff] }
  0xda   : > { %v2805_v43 = vpop.xlane.xlu0 %474  ;;  %v725_v36 = vadd.f32 %v382_v32, %v381_v30  ;;  %v408_v30 = vld [vmem:[%s2631_s10 + $0x658] sm:$0xff] }
  0xdc   : > { %687 = vadd.xlane.f32.xlu1 %v686_v38  ;;  %v388_v38 = vld [vmem:[%s2631_s10 + $0x5b8] sm:$0xff] }
  0xdd   : > { %684 = vadd.xlane.f32.xlu0 %v683_v40  ;;  %v2809_v47 = vpop.xlane.xlu1 %483  ;;  %v734_v44 = vadd.f32 %v388_v38, %v387_v37  ;;  %v764_v37 = vadd.f32 %v408_v30, %v407_v28  ;;  %v421_v28 = vld [vmem:[%s2631_s10 + $0x6c0] sm:$0xff]  ;;  %v422_v30 = vld [vmem:[%s2631_s10 + $0x6c8] sm:$0xff] }
  0xde   : > { %v2813_v51 = vpop.xlane.xlu0 %480 }
  0xe0   : > { %693 = vadd.xlane.f32.xlu1 %v692_v46  ;;  %v731_v46 = vadd.f32 %v386_v42, %v385_v41  ;;  %v411_v42 = vld [vmem:[%s2631_s10 + $0x670] sm:$0xff] }
  0xe1   : > { %690 = vadd.xlane.f32.xlu0 %v689_v48  ;;  %v2817_v55 = vpop.xlane.xlu1 %489  ;;  %v391_v48 = vld [vmem:[%s2631_s10 + $0x5d0] sm:$0xff] }
  0xe2   : > { %v2821_v59 = vpop.xlane.xlu0 %486 }
  0xe4   : > { %699 = vadd.xlane.f32.xlu1 %v698_v54  ;;  %v740_v54 = vadd.f32 %v392_v49, %v391_v48  ;;  %v409_v48 = vld [vmem:[%s2631_s10 + $0x660] sm:$0xff]  ;;  %v410_v49 = vld [vmem:[%s2631_s10 + $0x668] sm:$0xff] }
  0xe5   : > { %696 = vadd.xlane.f32.xlu0 %v695_v56  ;;  %v2825_v63 = vpop.xlane.xlu1 %495 }
  0xe6   : > { %v2829_v3 = vpop.xlane.xlu0 %492 }
  0xe8   : > { %705 = vadd.xlane.f32.xlu1 %v704_v62  ;;  %v393_v62 = vld [vmem:[%s2631_s10 + $0x5e0] sm:$0xff] }
  0xe9   : > { %702 = vadd.xlane.f32.xlu0 %v701_v0  ;;  %v2833_v7 = vpop.xlane.xlu1 %501  ;;  %v394_v0 = vld [vmem:[%s2631_s10 + $0x5e8] sm:$0xff] }
  0xea   : > { %v2837_v11 = vpop.xlane.xlu0 %498  ;;  %v743_v4 = vadd.f32 %v394_v0, %v393_v62  ;;  %v413_v62 = vld [vmem:[%s2631_s10 + $0x680] sm:$0xff]  ;;  %v414_v0 = vld [vmem:[%s2631_s10 + $0x688] sm:$0xff] }
  0xec   : > { %711 = vadd.xlane.f32.xlu1 %v710_v6  ;;  %v400_v6 = vld [vmem:[%s2631_s10 + $0x618] sm:$0xff] }
  0xed   : > { %708 = vadd.xlane.f32.xlu0 %v707_v8  ;;  %v2841_v15 = vpop.xlane.xlu1 %507  ;;  %v752_v12 = vadd.f32 %v400_v6, %v399_v5  ;;  %v773_v5 = vadd.f32 %v414_v0, %v413_v62  ;;  %v419_v6 = vld [vmem:[%s2631_s10 + $0x6b0] sm:$0xff]  ;;  %v432_v62 = vld [vmem:[%s2631_s10 + $0x718] sm:$0xff] }
  0xee   : > { %v2845_v19 = vpop.xlane.xlu0 %504 }
  0xf0   : > { %717 = vadd.xlane.f32.xlu1 %v716_v14  ;;  %v749_v14 = vadd.f32 %v398_v10, %v397_v9  ;;  %v420_v9 = vld [vmem:[%s2631_s10 + $0x6b8] sm:$0xff] }
  0xf1   : > { %714 = vadd.xlane.f32.xlu0 %v713_v16  ;;  %v2849_v24 = vpop.xlane.xlu1 %513  ;;  %v403_v16 = vld [vmem:[%s2631_s10 + $0x630] sm:$0xff] }
  0xf2   : > { %v2853_v29 = vpop.xlane.xlu0 %510 }
  0xf4   : > { %723 = vadd.xlane.f32.xlu1 %v722_v22  ;;  %v758_v22 = vadd.f32 %v404_v17, %v403_v16  ;;  %v782_v16 = vadd.f32 %v420_v9, %v419_v6 }
  0xf5   : > { %720 = vadd.xlane.f32.xlu0 %v719_v25  ;;  %v2857_v34 = vpop.xlane.xlu1 %519 }
  0xf6   : > { %v2861_v40 = vpop.xlane.xlu0 %516 }
  0xf8   : > { %729 = vadd.xlane.f32.xlu1 %v728_v33  ;;  %v405_v33 = vld [vmem:[%s2631_s10 + $0x640] sm:$0xff] }
  0xf9   : > { %726 = vadd.xlane.f32.xlu0 %v725_v36  ;;  %v2865_v45 = vpop.xlane.xlu1 %525  ;;  %v406_v36 = vld [vmem:[%s2631_s10 + $0x648] sm:$0xff] }
  0xfa   : > { %v2869_v50 = vpop.xlane.xlu0 %522  ;;  %v761_v41 = vadd.f32 %v406_v36, %v405_v33 }
  0xfc   : > { %735 = vadd.xlane.f32.xlu1 %v734_v44  ;;  %v412_v44 = vld [vmem:[%s2631_s10 + $0x678] sm:$0xff] }
  0xfd   : > { %732 = vadd.xlane.f32.xlu0 %v731_v46  ;;  %v2873_v56 = vpop.xlane.xlu1 %531  ;;  %v770_v52 = vadd.f32 %v412_v44, %v411_v42  ;;  %v428_v42 = vld [vmem:[%s2631_s10 + $0x6f8] sm:$0xff] }
  0xfe   : > { %v2877_v61 = vpop.xlane.xlu0 %528 }
 0x100   : > { %741 = vadd.xlane.f32.xlu1 %v740_v54  ;;  %v767_v54 = vadd.f32 %v410_v49, %v409_v48  ;;  %v425_v48 = vld [vmem:[%s2631_s10 + $0x6e0] sm:$0xff]  ;;  %v426_v49 = vld [vmem:[%s2631_s10 + $0x6e8] sm:$0xff] }
 0x101   : > { %738 = vadd.xlane.f32.xlu0 %v737_v57  ;;  %v2881_v2 = vpop.xlane.xlu1 %537  ;;  %v415_v57 = vld [vmem:[%s2631_s10 + $0x690] sm:$0xff] }
 0x102   : > { %v2885_v8 = vpop.xlane.xlu0 %534 }
 0x104   : > { %747 = vadd.xlane.f32.xlu1 %v746_v1  ;;  %v776_v1 = vadd.f32 %v416_v58, %v415_v57  ;;  %v791_v57 = vadd.f32 %v426_v49, %v425_v48  ;;  %v431_v58 = vld [vmem:[%s2631_s10 + $0x710] sm:$0xff]  ;;  %v437_v48 = vld [vmem:[%s2631_s10 + $0x740] sm:$0xff]  ;;  %v438_v49 = vld [vmem:[%s2631_s10 + $0x748] sm:$0xff] }
 0x105   : > { %744 = vadd.xlane.f32.xlu0 %v743_v4  ;;  %v2889_v13 = vpop.xlane.xlu1 %543  ;;  %v800_v6 = vadd.f32 %v432_v62, %v431_v58  ;;  %v809_v58 = vadd.f32 %v438_v49, %v437_v48  ;;  %v443_v62 = vld [vmem:[%s2631_s10 + $0x770] sm:$0xff] }
 0x106   : > { %v2893_v18 = vpop.xlane.xlu0 %540 }
 0x108   : > { %753 = vadd.xlane.f32.xlu1 %v752_v12  ;;  %v417_v12 = vld [vmem:[%s2631_s10 + $0x6a0] sm:$0xff] }
 0x109   : > { %750 = vadd.xlane.f32.xlu0 %v749_v14  ;;  %v2897_v25 = vpop.xlane.xlu1 %549  ;;  %v418_v14 = vld [vmem:[%s2631_s10 + $0x6a8] sm:$0xff] }
 0x10a   : > { %v2901_v32 = vpop.xlane.xlu0 %546  ;;  %v779_v20 = vadd.f32 %v418_v14, %v417_v12  ;;  %v435_v14 = vld [vmem:[%s2631_s10 + $0x730] sm:$0xff] }
 0x10c   : > { %759 = vadd.xlane.f32.xlu1 %v758_v22  ;;  %v424_v22 = vld [vmem:[%s2631_s10 + $0x6d8] sm:$0xff] }
 0x10d   : > { %756 = vadd.xlane.f32.xlu0 %v755_v26  ;;  %v2905_v38 = vpop.xlane.xlu1 %555  ;;  %v788_v33 = vadd.f32 %v424_v22, %v423_v21  ;;  %v433_v21 = vld [vmem:[%s2631_s10 + $0x720] sm:$0xff]  ;;  %v434_v22 = vld [vmem:[%s2631_s10 + $0x728] sm:$0xff] }
 0x10e   : > { %v2909_v46 = vpop.xlane.xlu0 %552 }
 0x110   : > { %765 = vadd.xlane.f32.xlu1 %v764_v37  ;;  %v785_v37 = vadd.f32 %v422_v30, %v421_v28 }
 0x111   : > { %762 = vadd.xlane.f32.xlu0 %v761_v41  ;;  %v2913_v53 = vpop.xlane.xlu1 %561  ;;  %v427_v41 = vld [vmem:[%s2631_s10 + $0x6f0] sm:$0xff] }
 0x112   : > { %v2917_v60 = vpop.xlane.xlu0 %558 }
 0x114   : > { %771 = vadd.xlane.f32.xlu1 %v770_v52  ;;  %v794_v52 = vadd.f32 %v428_v42, %v427_v41  ;;  %v440_v41 = vld [vmem:[%s2631_s10 + $0x758] sm:$0xff] }
 0x115   : > { %768 = vadd.xlane.f32.xlu0 %v767_v54  ;;  %v2921_v4 = vpop.xlane.xlu1 %567 }
 0x116   : > { %v2925_v10 = vpop.xlane.xlu0 %564 }
 0x118   : > { %777 = vadd.xlane.f32.xlu1 %v776_v1  ;;  %v429_v1 = vld [vmem:[%s2631_s10 + $0x700] sm:$0xff] }
 0x119   : > { %774 = vadd.xlane.f32.xlu0 %v773_v5  ;;  %v2929_v17 = vpop.xlane.xlu1 %573  ;;  %v430_v5 = vld [vmem:[%s2631_s10 + $0x708] sm:$0xff] }
 0x11a   : > { %v2933_v26 = vpop.xlane.xlu0 %570  ;;  %v797_v12 = vadd.f32 %v430_v5, %v429_v1  ;;  %v444_v1 = vld [vmem:[%s2631_s10 + $0x778] sm:$0xff] }
 0x11c   : > { %783 = vadd.xlane.f32.xlu1 %v782_v16  ;;  %v436_v16 = vld [vmem:[%s2631_s10 + $0x738] sm:$0xff] }
 0x11d   : > { %780 = vadd.xlane.f32.xlu0 %v779_v20  ;;  %v2937_v36 = vpop.xlane.xlu1 %579  ;;  %v806_v28 = vadd.f32 %v436_v16, %v435_v14  ;;  %v818_v14 = vadd.f32 %v444_v1, %v443_v62  ;;  %v452_v62 = vld [vmem:[%s2631_s10 + $0x7b8] sm:$0xff] }
 0x11e   : > { %v2941_v44 = vpop.xlane.xlu0 %576 }
 0x120   : > { %789 = vadd.xlane.f32.xlu1 %v788_v33  ;;  %v803_v33 = vadd.f32 %v434_v22, %v433_v21  ;;  %v447_v22 = vld [vmem:[%s2631_s10 + $0x790] sm:$0xff] }
 0x121   : > { %786 = vadd.xlane.f32.xlu0 %v785_v37  ;;  %v2945_v54 = vpop.xlane.xlu1 %585  ;;  %v439_v37 = vld [vmem:[%s2631_s10 + $0x750] sm:$0xff] }
 0x122   : > { %v2949_v0 = vpop.xlane.xlu0 %582 }
 0x124   : > { %795 = vadd.xlane.f32.xlu1 %v794_v52  ;;  %v812_v52 = vadd.f32 %v440_v41, %v439_v37  ;;  %v445_v37 = vld [vmem:[%s2631_s10 + $0x780] sm:$0xff]  ;;  %v446_v41 = vld [vmem:[%s2631_s10 + $0x788] sm:$0xff] }
 0x125   : > { %792 = vadd.xlane.f32.xlu0 %v791_v57  ;;  %v2953_v9 = vpop.xlane.xlu1 %591 }
 0x126   : > { %v2957_v20 = vpop.xlane.xlu0 %588 }
 0x128   : > { %801 = vadd.xlane.f32.xlu1 %v800_v6  ;;  %v441_v6 = vld [vmem:[%s2631_s10 + $0x760] sm:$0xff] }
 0x129   : > { %798 = vadd.xlane.f32.xlu0 %v797_v12  ;;  %v2961_v30 = vpop.xlane.xlu1 %597  ;;  %v442_v12 = vld [vmem:[%s2631_s10 + $0x768] sm:$0xff] }
 0x12a   : > { %v2965_v42 = vpop.xlane.xlu0 %594  ;;  %v815_v21 = vadd.f32 %v442_v12, %v441_v6  ;;  %v449_v6 = vld [vmem:[%s2631_s10 + $0x7a0] sm:$0xff]  ;;  %v450_v12 = vld [vmem:[%s2631_s10 + $0x7a8] sm:$0xff] }
 0x12c   : > { %807 = vadd.xlane.f32.xlu1 %v806_v28  ;;  %v448_v28 = vld [vmem:[%s2631_s10 + $0x798] sm:$0xff] }
 0x12d   : > { %804 = vadd.xlane.f32.xlu0 %v803_v33  ;;  %v2969_v57 = vpop.xlane.xlu1 %603  ;;  %v824_v48 = vadd.f32 %v448_v28, %v447_v22  ;;  %v455_v22 = vld [vmem:[%s2631_s10 + $0x7d0] sm:$0xff]  ;;  %v456_v28 = vld [vmem:[%s2631_s10 + $0x7d8] sm:$0xff] }
 0x12e   : > { %3929 = vst [vmem:[#allocation9_spill] sm:$0xff] %v2969_v57  ;;  %v2973_v5 = vpop.xlane.xlu0 %600  ;;  %v459_v57 = vld [vmem:[%s2631_s10 + $0x7f0] sm:$0xff] }
 0x12f   : > { %3930 = vst [vmem:[#allocation10_spill] sm:$0xff] %v2973_v5 }
 0x130   : > { %813 = vadd.xlane.f32.xlu1 %v812_v52  ;;  %v821_v52 = vadd.f32 %v446_v41, %v445_v37  ;;  %v453_v37 = vld [vmem:[%s2631_s10 + $0x7c0] sm:$0xff]  ;;  %v454_v41 = vld [vmem:[%s2631_s10 + $0x7c8] sm:$0xff] }
 0x131   : > { %810 = vadd.xlane.f32.xlu0 %v809_v58  ;;  %v2977_v16 = vpop.xlane.xlu1 %609  ;;  %v451_v58 = vld [vmem:[%s2631_s10 + $0x7b0] sm:$0xff] }
 0x132   : > { %3931 = vst [vmem:[#allocation11_spill] sm:$0xff] %v2977_v16  ;;  %v2981_v33 = vpop.xlane.xlu0 %606  ;;  %v830_v16 = vadd.f32 %v452_v62, %v451_v58  ;;  %v460_v58 = vld [vmem:[%s2631_s10 + $0x7f8] sm:$0xff]  ;;  %v457_v62 = vld [vmem:[%s2631_s10 + $0x7e0] sm:$0xff] }
 0x133   : > { %3932 = vst [vmem:[#allocation12_spill] sm:$0xff] %v2981_v33 }
 0x134   : > { %819 = vadd.xlane.f32.xlu1 %v818_v14 }
 0x135   : > { %816 = vadd.xlane.f32.xlu0 %v815_v21  ;;  %v2985_v49 = vpop.xlane.xlu1 %615  ;;  %v827_v21 = vadd.f32 %v450_v12, %v449_v6  ;;  %v842_v6 = vadd.f32 %v460_v58, %v459_v57 }
 0x136   : > { %3933 = vst [vmem:[#allocation13_spill] sm:$0xff] %v2985_v49  ;;  %v2989_v1 = vpop.xlane.xlu0 %612 }
 0x137   : > { %3934 = vst [vmem:[#allocation14_spill] sm:$0xff] %v2989_v1  ;;  %v836_v1 = vadd.f32 %v456_v28, %v455_v22 }
 0x138   : > { %825 = vadd.xlane.f32.xlu1 %v824_v48  ;;  %v833_v48 = vadd.f32 %v454_v41, %v453_v37 }
 0x139   : > { %822 = vadd.xlane.f32.xlu0 %v821_v52  ;;  %v2993_v14 = vpop.xlane.xlu1 %621 }
 0x13a   : > { %3935 = vst [vmem:[#allocation15_spill] sm:$0xff] %v2993_v14  ;;  %v2997_v49 = vpop.xlane.xlu0 %618  ;;  %v458_v14 = vld [vmem:[%s2631_s10 + $0x7e8] sm:$0xff] }
 0x13b   : > { %3936 = vst [vmem:[#allocation16_spill] sm:$0xff] %v2997_v49  ;;  %v839_v49 = vadd.f32 %v458_v14, %v457_v62  ;;  %v2343_v14 = vld [vmem:[#allocation5] ss:$0 sm:$0xff] }
 0x13c   : > { %831 = vadd.xlane.f32.xlu1 %v830_v16 }
 0x13d   : > { %828 = vadd.xlane.f32.xlu0 %v827_v21  ;;  %v3001_v33 = vpop.xlane.xlu1 %627 }
 0x13e   : > { %v3005_v52 = vpop.xlane.xlu0 %624 }
 0x140   : > { %837 = vadd.xlane.f32.xlu1 %v836_v1 }
 0x141   : > { %834 = vadd.xlane.f32.xlu0 %v833_v48  ;;  %v3009_v12 = vpop.xlane.xlu1 %633  ;;  %v2501_v48 = vmov 0  }
 0x142   : > { %v3011_v5 = vpop.xlane.xlu0 %630  ;;  %2402 = vset.pattern.permute.xlu1 %v2501_v48  ;;  %2401 = vset.pattern.permute.xlu0 %v2501_v48 }
 0x144   : > { %843 = vadd.xlane.f32.xlu1 %v842_v6 }
 0x145   : > { %840 = vadd.xlane.f32.xlu0 %v839_v49  ;;  %v3013_v16 = vpop.xlane.xlu1 %639 }
 0x146   : > { %v3015_v21 = vpop.xlane.xlu0 %636 }
 0x149   : > { %v3017_v22 = vpop.xlane.xlu1 %645 }
 0x14a   : > { %3937 = vst [vmem:[#allocation17_spill] sm:$0xff] %v3017_v22  ;;  %v3019_v28 = vpop.xlane.xlu0 %642 }
 0x14d   : > { %v3021_v37 = vpop.xlane.xlu1 %651 }
 0x14e   : > { %3938 = vst [vmem:[#allocation18_spill] sm:$0xff] %v3021_v37  ;;  %v3023_v1 = vpop.xlane.xlu0 %648 }
 0x14f   : > { %3939 = vst [vmem:[#allocation19_spill] sm:$0xff] %v3023_v1 }
 0x151   : > { %v3025_v57 = vpop.xlane.xlu1 %657 }
 0x152   : > { %3940 = vst [vmem:[#allocation20_spill] sm:$0xff] %v3025_v57  ;;  %v3027_v41 = vpop.xlane.xlu0 %654 }
 0x153   : > { %3941 = vst [vmem:[#allocation21_spill] sm:$0xff] %v3027_v41 }
 0x155   : > { %v3029_v49 = vpop.xlane.xlu1 %663  ;;  %856 = vbcast.lane.b32.xlu1 %v2343_v14, 264 }
 0x156   : > { %3942 = vst [vmem:[#allocation22_spill] sm:$0xff] %v3029_v49  ;;  %v3031_v58 = vpop.xlane.xlu0 %660 }
 0x157   : > { %3943 = vst [vmem:[#allocation23_spill] sm:$0xff] %v3031_v58 }
 0x159   : > { %v3033_v62 = vpop.xlane.xlu1 %669  ;;  %860 = vbcast.lane.b32.xlu1 %v2343_v14, 272 }
 0x15a   : > { %3944 = vst [vmem:[#allocation24_spill] sm:$0xff] %v3033_v62  ;;  %v3035_v6 = vpop.xlane.xlu0 %666 }
 0x15b   : > { %3945 = vst [vmem:[#allocation25_spill] sm:$0xff] %v3035_v6  ;;  %852 = vbcast.lane.b32.xlu0 %v2343_v14, 256 }
 0x15d   : > { %v3037_v37 = vpop.xlane.xlu1 %675  ;;  %864 = vbcast.lane.b32.xlu1 %v2343_v14, 280 }
 0x15e   : > { %3946 = vst [vmem:[#allocation26_spill] sm:$0xff] %v3037_v37  ;;  %v3039_v57 = vpop.xlane.xlu0 %672 }
 0x15f   : > { %3947 = vst [vmem:[#allocation27_spill] sm:$0xff] %v3039_v57  ;;  %868 = vbcast.lane.b32.xlu0 %v2343_v14, 288 }
 0x161   : > { %v3041_v41 = vpop.xlane.xlu1 %681  ;;  %872 = vbcast.lane.b32.xlu1 %v2343_v14, 296 }
 0x162   : > { %3948 = vst [vmem:[#allocation28_spill] sm:$0xff] %v3041_v41  ;;  %v3043_v48 = vpop.xlane.xlu0 %678 }
 0x163   : > { %3949 = vst [vmem:[#allocation29_spill] sm:$0xff] %v3043_v48  ;;  %876 = vbcast.lane.b32.xlu0 %v2343_v14, 304 }
 0x165   : > { %v3045_v49 = vpop.xlane.xlu1 %687  ;;  %880 = vbcast.lane.b32.xlu1 %v2343_v14, 312 }
 0x166   : > { %3950 = vst [vmem:[#allocation30_spill] sm:$0xff] %v3045_v49  ;;  %v3047_v62 = vpop.xlane.xlu0 %684 }
 0x167   : > { %3951 = vst [vmem:[#allocation31_spill] sm:$0xff] %v3047_v62  ;;  %884 = vbcast.lane.b32.xlu0 %v2343_v14, 320 }
 0x169   : > { %v3049_v6 = vpop.xlane.xlu1 %693  ;;  %888 = vbcast.lane.b32.xlu1 %v2343_v14, 328 }
 0x16a   : > { %3952 = vst [vmem:[#allocation32_spill] sm:$0xff] %v3049_v6  ;;  %v3051_v37 = vpop.xlane.xlu0 %690 }
 0x16b   : > { %3953 = vst [vmem:[#allocation33_spill] sm:$0xff] %v3051_v37  ;;  %892 = vbcast.lane.b32.xlu0 %v2343_v14, 336 }
 0x16d   : > { %v3053_v57 = vpop.xlane.xlu1 %699  ;;  %896 = vbcast.lane.b32.xlu1 %v2343_v14, 344 }
 0x16e   : > { %3954 = vst [vmem:[#allocation34_spill] sm:$0xff] %v3053_v57  ;;  %v3055_v41 = vpop.xlane.xlu0 %696 }
 0x16f   : > { %3955 = vst [vmem:[#allocation35_spill] sm:$0xff] %v3055_v41  ;;  %900 = vbcast.lane.b32.xlu0 %v2343_v14, 352 }
 0x171   : > { %v3057_v48 = vpop.xlane.xlu1 %705  ;;  %904 = vbcast.lane.b32.xlu1 %v2343_v14, 360 }
 0x172   : > { %3956 = vst [vmem:[#allocation36_spill] sm:$0xff] %v3057_v48  ;;  %v3059_v49 = vpop.xlane.xlu0 %702 }
 0x173   : > { %3957 = vst [vmem:[#allocation37_spill] sm:$0xff] %v3059_v49  ;;  %908 = vbcast.lane.b32.xlu0 %v2343_v14, 368 }
 0x175   : > { %v3061_v62 = vpop.xlane.xlu1 %711  ;;  %912 = vbcast.lane.b32.xlu1 %v2343_v14, 376 }
 0x176   : > { %3958 = vst [vmem:[#allocation38_spill] sm:$0xff] %v3061_v62  ;;  %v3063_v6 = vpop.xlane.xlu0 %708 }
 0x177   : > { %3959 = vst [vmem:[#allocation39_spill] sm:$0xff] %v3063_v6 }
 0x179   : > { %v3065_v58 = vpop.xlane.xlu1 %717 }
 0x17a   : > { %3960 = vst [vmem:[#allocation40_spill] sm:$0xff] %v3065_v58  ;;  %v3067_v37 = vpop.xlane.xlu0 %714 }
 0x17b   : > { %3961 = vst [vmem:[#allocation41_spill] sm:$0xff] %v3067_v37 }
 0x17d   : > { %v3069_v57 = vpop.xlane.xlu1 %723 }
 0x17e   : > { %3962 = vst [vmem:[#allocation42_spill] sm:$0xff] %v3069_v57  ;;  %v3071_v1 = vpop.xlane.xlu0 %720 }
 0x17f   : > { %3963 = vst [vmem:[#allocation43_spill] sm:$0xff] %v3071_v1 }
 0x181   : > { %v3073_v41 = vpop.xlane.xlu1 %729 }
 0x182   : > { %3964 = vst [vmem:[#allocation44_spill] sm:$0xff] %v3073_v41  ;;  %v3075_v48 = vpop.xlane.xlu0 %726 }
 0x183   : > { %3965 = vst [vmem:[#allocation45_spill] sm:$0xff] %v3075_v48 }
 0x185   : > { %v3077_v22 = vpop.xlane.xlu1 %735 }
 0x186   : > { %3966 = vst [vmem:[#allocation46_spill] sm:$0xff] %v3077_v22  ;;  %v3079_v49 = vpop.xlane.xlu0 %732 }
 0x187   : > { %3967 = vst [vmem:[#allocation47_spill] sm:$0xff] %v3079_v49 }
 0x189   : > { %v3081_v62 = vpop.xlane.xlu1 %741 }
 0x18a   : > { %3968 = vst [vmem:[#allocation48_spill] sm:$0xff] %v3081_v62  ;;  %v3083_v14 = vpop.xlane.xlu0 %738 }
 0x18b   : > { %3969 = vst [vmem:[#allocation49_spill] sm:$0xff] %v3083_v14 }
 0x18d   : > { %v3085_v6 = vpop.xlane.xlu1 %747 }
 0x18e   : > { %3970 = vst [vmem:[#allocation50_spill] sm:$0xff] %v3085_v6  ;;  %v3087_v58 = vpop.xlane.xlu0 %744 }
 0x18f   : > { %3971 = vst [vmem:[#allocation51_spill] sm:$0xff] %v3087_v58 }
 0x191   : > { %v3089_v37 = vpop.xlane.xlu1 %753 }
 0x192   : > { %3972 = vst [vmem:[#allocation52_spill] sm:$0xff] %v3089_v37  ;;  %v3091_v57 = vpop.xlane.xlu0 %750 }
 0x193   : > { %3973 = vst [vmem:[#allocation53_spill] sm:$0xff] %v3091_v57 }
 0x195   : > { %v3093_v1 = vpop.xlane.xlu1 %759 }
 0x196   : > { %3974 = vst [vmem:[#allocation54_spill] sm:$0xff] %v3093_v1  ;;  %v3095_v41 = vpop.xlane.xlu0 %756 }
 0x197   : > { %3975 = vst [vmem:[#allocation55_spill] sm:$0xff] %v3095_v41 }
 0x199   : > { %v3097_v48 = vpop.xlane.xlu1 %765 }
 0x19a   : > { %3976 = vst [vmem:[#allocation56_spill] sm:$0xff] %v3097_v48  ;;  %v3099_v22 = vpop.xlane.xlu0 %762 }
 0x19b   : > { %3977 = vst [vmem:[#allocation57_spill] sm:$0xff] %v3099_v22 }
 0x19d   : > { %v3101_v49 = vpop.xlane.xlu1 %771 }
 0x19e   : > { %3978 = vst [vmem:[#allocation58_spill] sm:$0xff] %v3101_v49  ;;  %v3103_v62 = vpop.xlane.xlu0 %768 }
 0x19f   : > { %3979 = vst [vmem:[#allocation59_spill] sm:$0xff] %v3103_v62 }
 0x1a1   : > { %v3105_v14 = vpop.xlane.xlu1 %777 }
 0x1a2   : > { %3980 = vst [vmem:[#allocation60_spill] sm:$0xff] %v3105_v14  ;;  %v3107_v6 = vpop.xlane.xlu0 %774 }
 0x1a3   : > { %3981 = vst [vmem:[#allocation61_spill] sm:$0xff] %v3107_v6 }
 0x1a5   : > { %v3109_v58 = vpop.xlane.xlu1 %783 }
 0x1a6   : > { %3982 = vst [vmem:[#allocation62_spill] sm:$0xff] %v3109_v58  ;;  %v3111_v37 = vpop.xlane.xlu0 %780 }
 0x1a7   : > { %3983 = vst [vmem:[#allocation63_spill] sm:$0xff] %v3111_v37 }
 0x1a9   : > { %v3113_v57 = vpop.xlane.xlu1 %789 }
 0x1aa   : > { %3984 = vst [vmem:[#allocation64_spill] sm:$0xff] %v3113_v57  ;;  %v3115_v1 = vpop.xlane.xlu0 %786 }
 0x1ab   : > { %3985 = vst [vmem:[#allocation65_spill] sm:$0xff] %v3115_v1 }
 0x1ad   : > { %v3117_v41 = vpop.xlane.xlu1 %795 }
 0x1ae   : > { %3986 = vst [vmem:[#allocation66_spill] sm:$0xff] %v3117_v41  ;;  %v3119_v48 = vpop.xlane.xlu0 %792 }
 0x1af   : > { %3987 = vst [vmem:[#allocation67_spill] sm:$0xff] %v3119_v48 }
 0x1b1   : > { %v3121_v22 = vpop.xlane.xlu1 %801 }
 0x1b2   : > { %3988 = vst [vmem:[#allocation68_spill] sm:$0xff] %v3121_v22  ;;  %v3123_v49 = vpop.xlane.xlu0 %798 }
 0x1b3   : > { %3989 = vst [vmem:[#allocation69_spill] sm:$0xff] %v3123_v49 }
 0x1b5   : > { %v3125_v62 = vpop.xlane.xlu1 %807 }
 0x1b6   : > { %3990 = vst [vmem:[#allocation70_spill] sm:$0xff] %v3125_v62  ;;  %v3127_v14 = vpop.xlane.xlu0 %804 }
 0x1b7   : > { %3991 = vst [vmem:[#allocation71_spill] sm:$0xff] %v3127_v14 }
 0x1b9   : > { %v3129_v6 = vpop.xlane.xlu1 %813 }
 0x1ba   : > { %3992 = vst [vmem:[#allocation72_spill] sm:$0xff] %v3129_v6  ;;  %v3131_v58 = vpop.xlane.xlu0 %810 }
 0x1bb   : > { %3993 = vst [vmem:[#allocation73_spill] sm:$0xff] %v3131_v58 }
 0x1bd   : > { %v3133_v37 = vpop.xlane.xlu1 %819 }
 0x1be   : > { %3994 = vst [vmem:[#allocation74_spill] sm:$0xff] %v3133_v37  ;;  %v3135_v57 = vpop.xlane.xlu0 %816 }
 0x1c1   : > { %v3137_v1 = vpop.xlane.xlu1 %825 }
 0x1c2   : > { %3995 = vst [vmem:[#allocation75_spill] sm:$0xff] %v3137_v1  ;;  %v3139_v41 = vpop.xlane.xlu0 %822 }
 0x1c3   : > { %3996 = vst [vmem:[#allocation76_spill] sm:$0xff] %v3139_v41 }
 0x1c5   : > { %v3141_v48 = vpop.xlane.xlu1 %831 }
 0x1c6   : > { %3997 = vst [vmem:[#allocation77_spill] sm:$0xff] %v3141_v48  ;;  %v3143_v22 = vpop.xlane.xlu0 %828 }
 0x1c7   : > { %3998 = vst [vmem:[#allocation78_spill] sm:$0xff] %v3143_v22 }
 0x1c9   : > { %v3145_v49 = vpop.xlane.xlu1 %837 }
 0x1ca   : > { %3999 = vst [vmem:[#allocation79_spill] sm:$0xff] %v3145_v49  ;;  %v3147_v62 = vpop.xlane.xlu0 %834 }
 0x1cb   : > { %4000 = vst [vmem:[#allocation80_spill] sm:$0xff] %v3147_v62 }
 0x1cd   : > { %v3149_v14 = vpop.xlane.xlu1 %843 }
 0x1ce   : > { %4001 = vst [vmem:[#allocation81_spill] sm:$0xff] %v3149_v14  ;;  %v3151_v6 = vpop.xlane.xlu0 %840 }
 0x1cf   : > { %4002 = vst [vmem:[#allocation82_spill] sm:$0xff] %v3151_v6 }
 0x1d1   : > { %v3153_v58 = vpop.permute.xlu1 %856 }
 0x1d2   : > { %v3155_v37 = vpop.permute.xlu0 %852  ;;  %v931_v1 = vmul.f32 %v3153_v58, %v2797_v35 }
 0x1d3   : > { %v930_v48 = vmul.f32 %v3155_v37, %v2789_v27 }
 0x1d4   : > { %1190 = vperm.xlu1 %2402, %v931_v1  }
 0x1d5   : > { %1187 = vperm.xlu0 %2401, %v930_v48   ;;  %v3161_v22 = vpop.permute.xlu1 %860 }
 0x1d6   : > { %v3163_v49 = vpop.permute.xlu0 %868  ;;  %v932_v14 = vmul.f32 %v3161_v22, %v2785_v23 }
 0x1d7   : > { %v934_v27 = vmul.f32 %v3163_v49, %v2805_v43 }
 0x1d8   : > { %1193 = vperm.xlu1 %2402, %v932_v14  }
 0x1d9   : > { %v3167_v6 = vpop.permute.xlu1 %864 }
 0x1da   : > { %v3169_v62 = vpop.permute.xlu0 %876  ;;  %v933_v35 = vmul.f32 %v3167_v6, %v2793_v31 }
 0x1db   : > { %v936_v14 = vmul.f32 %v3169_v62, %v2813_v51 }
 0x1dc   : > { %1196 = vperm.xlu0 %2401, %v933_v35   ;;  %1199 = vperm.xlu1 %2402, %v934_v27  }
 0x1dd   : > { %v3175_v1 = vpop.permute.xlu1 %872 }
 0x1de   : > { %v3177_v48 = vpop.permute.xlu0 %884  ;;  %v935_v23 = vmul.f32 %v3175_v1, %v2801_v39 }
 0x1df   : > { %4003 = vst [vmem:[#allocation83_spill] sm:$0xff] %v3177_v48  ;;  %v938_v35 = vmul.f32 %v3177_v48, %v2821_v59 }
 0x1e0   : > { %1202 = vperm.xlu0 %2401, %v935_v23   ;;  %1205 = vperm.xlu1 %2402, %v936_v14  }
 0x1e1   : > { %v3183_v41 = vpop.permute.xlu1 %880 }
 0x1e2   : > { %v3185_v31 = vpop.permute.xlu0 %892  ;;  %v937_v43 = vmul.f32 %v3183_v41, %v2809_v47 }
 0x1e3   : > { %4004 = vst [vmem:[#allocation84_spill] sm:$0xff] %v3185_v31  ;;  %v940_v23 = vmul.f32 %v3185_v31, %v2829_v3 }
 0x1e4   : > { %1208 = vperm.xlu0 %2401, %v937_v43   ;;  %1211 = vperm.xlu1 %2402, %v938_v35  }
 0x1e5   : > { %v3191_v27 = vpop.permute.xlu1 %888 }
 0x1e6   : > { %4005 = vst [vmem:[#allocation85_spill] sm:$0xff] %v3191_v27  ;;  %v3193_v39 = vpop.permute.xlu0 %900  ;;  %v939_v51 = vmul.f32 %v3191_v27, %v2817_v55 }
 0x1e7   : > { %4006 = vst [vmem:[#allocation86_spill] sm:$0xff] %v3193_v39  ;;  %v942_v59 = vmul.f32 %v3193_v39, %v2837_v11  ;;  %v946_v11 = vmul.f32 %v3155_v37, %v2853_v29  ;;  %v952_v29 = vmul.f32 %v3169_v62, %v2877_v61  ;;  %v958_v61 = vmul.f32 %v3193_v39, %v2901_v32 }
 0x1e8   : > { %1214 = vperm.xlu0 %2401, %v939_v51   ;;  %1217 = vperm.xlu1 %2402, %v940_v23   ;;  %v947_v23 = vmul.f32 %v3153_v58, %v2849_v24  ;;  %v953_v24 = vmul.f32 %v3183_v41, %v2873_v56  ;;  %v964_v32 = vmul.f32 %v3161_v22, %v2925_v10 }
 0x1e9   : > { %v3199_v14 = vpop.permute.xlu1 %896  ;;  %v970_v10 = vmul.f32 %v3177_v48, %v2949_v0  ;;  %v4011_v0 = vld [vmem:[#allocation10_spill] sm:$0xff] }
 0x1ea   : > { %4007 = vst [vmem:[#allocation87_spill] sm:$0xff] %v3199_v14  ;;  %v941_v47 = vmul.f32 %v3199_v14, %v2825_v63  ;;  %v3205_v43 = vpop.permute.xlu0 %908 }
 0x1eb   : > { %4008 = vst [vmem:[#allocation88_spill] sm:$0xff] %v3205_v43  ;;  %v944_v3 = vmul.f32 %v3205_v43, %v2845_v19  ;;  %v949_v19 = vmul.f32 %v3167_v6, %v2857_v34  ;;  %v955_v34 = vmul.f32 %v3191_v27, %v2881_v2 }
 0x1ec   : > { %1220 = vperm.xlu0 %2401, %v941_v47   ;;  %1223 = vperm.xlu1 %2402, %v942_v59   ;;  %v950_v47 = vmul.f32 %v3163_v49, %v2869_v50  ;;  %v956_v50 = vmul.f32 %v3185_v31, %v2893_v18  ;;  %v962_v18 = vmul.f32 %v3155_v37, %v2917_v60 }
 0x1ed   : > { %v3207_v35 = vpop.permute.xlu1 %904  ;;  %v968_v60 = vmul.f32 %v3169_v62, %v2941_v44  ;;  %v974_v44 = vmul.f32 %v3193_v39, %v2965_v42  ;;  %v976_v59 = vmul.f32 %v3205_v43, %v4011_v0 }
 0x1ee   : > { %4009 = vst [vmem:[#allocation89_spill] sm:$0xff] %v3207_v35  ;;  %v943_v55 = vmul.f32 %v3207_v35, %v2833_v7  ;;  %v948_v7 = vmul.f32 %v3161_v22, %v2861_v40  ;;  %v954_v40 = vmul.f32 %v3177_v48, %v2885_v8  ;;  %v959_v56 = vmul.f32 %v3207_v35, %v2897_v25 }
 0x1ef   : > { %v960_v8 = vmul.f32 %v3205_v43, %v2909_v46  ;;  %v965_v25 = vmul.f32 %v3167_v6, %v2921_v4  ;;  %v966_v46 = vmul.f32 %v3163_v49, %v2933_v26  ;;  %v971_v4 = vmul.f32 %v3191_v27, %v2945_v54  ;;  %v4012_v54 = vld [vmem:[#allocation9_spill] sm:$0xff] }
 0x1f0   : > { %1226 = vperm.xlu0 %2401, %v943_v55   ;;  %1229 = vperm.xlu1 %2402, %v944_v3   ;;  %v972_v26 = vmul.f32 %v3185_v31, %v2957_v20  ;;  %v4013_v55 = vld [vmem:[#allocation12_spill] sm:$0xff] }
 0x1f1   : > { %v3213_v51 = vpop.permute.xlu1 %912  ;;  %v978_v3 = vmul.f32 %v3155_v37, %v4013_v55 }
 0x1f2   : > { %4010 = vst [vmem:[#allocation90_spill] sm:$0xff] %v3213_v51  ;;  %v945_v63 = vmul.f32 %v3213_v51, %v2841_v15  ;;  %v951_v15 = vmul.f32 %v3175_v1, %v2865_v45  ;;  %v957_v45 = vmul.f32 %v3199_v14, %v2889_v13  ;;  %v961_v2 = vmul.f32 %v3213_v51, %v2905_v38 }
 0x1f3   : > { %v963_v13 = vmul.f32 %v3153_v58, %v2913_v53  ;;  %v967_v38 = vmul.f32 %v3175_v1, %v2929_v17  ;;  %v969_v53 = vmul.f32 %v3183_v41, %v2937_v36  ;;  %v973_v17 = vmul.f32 %v3199_v14, %v2953_v9  ;;  %v4014_v9 = vld [vmem:[#allocation11_spill] sm:$0xff] }
 0x1f4   : > { %1232 = vperm.xlu0 %2401, %v945_v63   ;;  %1235 = vperm.xlu1 %2402, %v946_v11   ;;  %v975_v36 = vmul.f32 %v3207_v35, %v2961_v30  ;;  %v977_v20 = vmul.f32 %v3213_v51, %v4012_v54  ;;  %v979_v42 = vmul.f32 %v3153_v58, %v4014_v9  ;;  %v4015_v63 = vld [vmem:[#allocation14_spill] sm:$0xff]  ;;  %v4016_v30 = vld [vmem:[#allocation13_spill] sm:$0xff] }
 0x1f5   : > { %v980_v11 = vmul.f32 %v3161_v22, %v4015_v63 }
 0x1f8   : > { %1238 = vperm.xlu0 %2401, %v947_v23   ;;  %1241 = vperm.xlu1 %2402, %v948_v7   ;;  %v981_v23 = vmul.f32 %v3167_v6, %v4016_v30  ;;  %v4017_v7 = vld [vmem:[#allocation16_spill] sm:$0xff] }
 0x1fc   : > { %1244 = vperm.xlu0 %2401, %v949_v19   ;;  %1247 = vperm.xlu1 %2402, %v950_v47   ;;  %v982_v19 = vmul.f32 %v3163_v49, %v4017_v7  ;;  %v4018_v47 = vld [vmem:[#allocation15_spill] sm:$0xff] }
 0x200   : > { %1250 = vperm.xlu0 %2401, %v951_v15   ;;  %1253 = vperm.xlu1 %2402, %v952_v29   ;;  %v983_v15 = vmul.f32 %v3175_v1, %v4018_v47  ;;  %v984_v29 = vmul.f32 %v3169_v62, %v3005_v52  ;;  %v989_v52 = vmul.f32 %v3199_v14, %v3013_v16 }
 0x204   : > { %1256 = vperm.xlu0 %2401, %v953_v24   ;;  %1259 = vperm.xlu1 %2402, %v954_v40   ;;  %v985_v24 = vmul.f32 %v3183_v41, %v3001_v33  ;;  %v986_v40 = vmul.f32 %v3177_v48, %v3011_v5  ;;  %v4019_v33 = vld [vmem:[#allocation17_spill] sm:$0xff] }
 0x205   : > { %v991_v5 = vmul.f32 %v3207_v35, %v4019_v33  ;;  %v4036_v33 = vld [vmem:[#allocation32_spill] sm:$0xff] }
 0x208   : > { %1262 = vperm.xlu0 %2401, %v955_v34   ;;  %1265 = vperm.xlu1 %2402, %v956_v50   ;;  %v987_v34 = vmul.f32 %v3191_v27, %v3009_v12  ;;  %v988_v50 = vmul.f32 %v3185_v31, %v3015_v21  ;;  %v4021_v21 = vld [vmem:[#allocation18_spill] sm:$0xff] }
 0x20c   : > { %1268 = vperm.xlu0 %2401, %v957_v45   ;;  %1271 = vperm.xlu1 %2402, %v958_v61   ;;  %v990_v45 = vmul.f32 %v3193_v39, %v3019_v28  ;;  %v4020_v61 = vld [vmem:[#allocation19_spill] sm:$0xff] }
 0x210   : > { %1274 = vperm.xlu0 %2401, %v959_v56   ;;  %1277 = vperm.xlu1 %2402, %v960_v8   ;;  %v992_v56 = vmul.f32 %v3205_v43, %v4020_v61  ;;  %v993_v8 = vmul.f32 %v3213_v51, %v4021_v21  ;;  %v4037_v61 = vld [vmem:[#allocation35_spill] sm:$0xff] }
 0x214   : > { %1280 = vperm.xlu0 %2401, %v961_v2   ;;  %1283 = vperm.xlu1 %2402, %v962_v18   ;;  %v4022_v2 = vld [vmem:[#allocation21_spill] sm:$0xff] }
 0x215   : > { %v994_v16 = vmul.f32 %v3155_v37, %v4022_v2  ;;  %v4039_v2 = vld [vmem:[#allocation34_spill] sm:$0xff] }
 0x218   : > { %1286 = vperm.xlu0 %2401, %v963_v13   ;;  %1289 = vperm.xlu1 %2402, %v964_v32   ;;  %v4023_v13 = vld [vmem:[#allocation20_spill] sm:$0xff] }
 0x219   : > { %v995_v32 = vmul.f32 %v3153_v58, %v4023_v13  ;;  %v4040_v13 = vld [vmem:[#allocation37_spill] sm:$0xff] }
 0x21c   : > { %1292 = vperm.xlu0 %2401, %v965_v25   ;;  %1295 = vperm.xlu1 %2402, %v966_v46   ;;  %v4024_v25 = vld [vmem:[#allocation23_spill] sm:$0xff] }
 0x21d   : > { %v996_v46 = vmul.f32 %v3161_v22, %v4024_v25 }
 0x220   : > { %1298 = vperm.xlu0 %2401, %v967_v38   ;;  %1301 = vperm.xlu1 %2402, %v968_v60  }
 0x224   : > { %1304 = vperm.xlu0 %2401, %v969_v53   ;;  %1307 = vperm.xlu1 %2402, %v970_v10   ;;  %v4025_v53 = vld [vmem:[#allocation22_spill] sm:$0xff] }
 0x225   : > { %v997_v10 = vmul.f32 %v3167_v6, %v4025_v53  ;;  %v4041_v53 = vld [vmem:[#allocation36_spill] sm:$0xff] }
 0x228   : > { %1310 = vperm.xlu0 %2401, %v971_v4   ;;  %1313 = vperm.xlu1 %2402, %v972_v26   ;;  %v4026_v4 = vld [vmem:[#allocation25_spill] sm:$0xff] }
 0x229   : > { %v998_v26 = vmul.f32 %v3163_v49, %v4026_v4  ;;  %v4042_v4 = vld [vmem:[#allocation39_spill] sm:$0xff] }
 0x22c   : > { %1316 = vperm.xlu0 %2401, %v973_v17   ;;  %1319 = vperm.xlu1 %2402, %v974_v44  }
 0x230   : > { %1322 = vperm.xlu0 %2401, %v975_v36   ;;  %1325 = vperm.xlu1 %2402, %v976_v59   ;;  %v4027_v36 = vld [vmem:[#allocation24_spill] sm:$0xff]  ;;  %v4028_v59 = vld [vmem:[#allocation27_spill] sm:$0xff] }
 0x231   : > { %v999_v0 = vmul.f32 %v3175_v1, %v4027_v36  ;;  %v1000_v54 = vmul.f32 %v3169_v62, %v4028_v59  ;;  %v4043_v59 = vld [vmem:[#allocation38_spill] sm:$0xff] }
 0x234   : > { %1328 = vperm.xlu0 %2401, %v977_v20   ;;  %1331 = vperm.xlu1 %2402, %v978_v3   ;;  %v4029_v3 = vld [vmem:[#allocation26_spill] sm:$0xff] }
 0x235   : > { %v1001_v9 = vmul.f32 %v3183_v41, %v4029_v3  ;;  %v4044_v3 = vld [vmem:[#allocation41_spill] sm:$0xff] }
 0x238   : > { %1334 = vperm.xlu0 %2401, %v979_v42   ;;  %1337 = vperm.xlu1 %2402, %v980_v11   ;;  %v4030_v42 = vld [vmem:[#allocation29_spill] sm:$0xff] }
 0x239   : > { %v1002_v63 = vmul.f32 %v3177_v48, %v4030_v42 }
 0x23c   : > { %1340 = vperm.xlu0 %2401, %v981_v23   ;;  %1343 = vperm.xlu1 %2402, %v982_v19   ;;  %v4031_v23 = vld [vmem:[#allocation28_spill] sm:$0xff]  ;;  %v4032_v19 = vld [vmem:[#allocation31_spill] sm:$0xff] }
 0x23d   : > { %v1003_v7 = vmul.f32 %v3191_v27, %v4031_v23  ;;  %v1004_v47 = vmul.f32 %v3185_v31, %v4032_v19  ;;  %v1570_v23 = vlaneseq }
 0x240   : > { %1346 = vperm.xlu0 %2401, %v983_v15   ;;  %1349 = vperm.xlu1 %2402, %v984_v29  }
 0x244   : > { %1352 = vperm.xlu0 %2401, %v985_v24   ;;  %1355 = vperm.xlu1 %2402, %v986_v40   ;;  %v4033_v24 = vld [vmem:[#allocation30_spill] sm:$0xff] }
 0x245   : > { %v1005_v40 = vmul.f32 %v3199_v14, %v4033_v24 }
 0x248   : > { %1358 = vperm.xlu0 %2401, %v987_v34   ;;  %1361 = vperm.xlu1 %2402, %v988_v50   ;;  %v4034_v34 = vld [vmem:[#allocation33_spill] sm:$0xff] }
 0x249   : > { %v1006_v50 = vmul.f32 %v3193_v39, %v4034_v34 }
 0x24c   : > { %1364 = vperm.xlu0 %2401, %v989_v52   ;;  %1367 = vperm.xlu1 %2402, %v990_v45  }
 0x24f   : > { %v3311_v12 = vpop.permute.xlu1 %1190 }
 0x250   : > { %1370 = vperm.xlu0 %2401, %v991_v5   ;;  %1373 = vperm.xlu1 %2402, %v992_v56   ;;  %v3317_v18 = vpop.permute.xlu0 %1187  ;;  %v1007_v5 = vmul.f32 %v3207_v35, %v4036_v33  ;;  %v1008_v56 = vmul.f32 %v3205_v43, %v4037_v61  ;;  %v4047_v33 = vld [vmem:[#allocation42_spill] sm:$0xff]  ;;  %v4048_v61 = vld [vmem:[#allocation45_spill] sm:$0xff] }
 0x253   : > { %v3319_v28 = vpop.permute.xlu1 %1193 }
 0x254   : > { %1376 = vperm.xlu0 %2401, %v993_v8   ;;  %1379 = vperm.xlu1 %2402, %v994_v16   ;;  %v1009_v16 = vmul.f32 %v3213_v51, %v4039_v2 }
 0x257   : > { %v3325_v38 = vpop.permute.xlu1 %1199  ;;  %v3327_v60 = vpop.permute.xlu0 %1196 }
 0x258   : > { %1382 = vperm.xlu0 %2401, %v995_v32   ;;  %1385 = vperm.xlu1 %2402, %v996_v46   ;;  %v1010_v32 = vmul.f32 %v3155_v37, %v4040_v13  ;;  %v3419_v13 = vshrl.u32 %v1570_v23, 7 }
 0x25b   : > { %v3333_v17 = vpop.permute.xlu1 %1205  ;;  %v3335_v44 = vpop.permute.xlu0 %1202 }
 0x25c   : > { %1388 = vperm.xlu0 %2401, %v997_v10   ;;  %1391 = vperm.xlu1 %2402, %v998_v26   ;;  %v1011_v10 = vmul.f32 %v3153_v58, %v4041_v53  ;;  %v1012_v26 = vmul.f32 %v3161_v22, %v4042_v4  ;;  %v4049_v53 = vld [vmem:[#allocation44_spill] sm:$0xff]  ;;  %v4050_v4 = vld [vmem:[#allocation47_spill] sm:$0xff] }
 0x25f   : > { %v3341_v20 = vpop.permute.xlu1 %1211  ;;  %v3343_v55 = vpop.permute.xlu0 %1208 }
 0x260   : > { %1394 = vperm.xlu0 %2401, %v999_v0   ;;  %1397 = vperm.xlu1 %2402, %v1000_v54   ;;  %v1013_v54 = vmul.f32 %v3167_v6, %v4043_v59 }
 0x263   : > { %v3349_v11 = vpop.permute.xlu1 %1217  ;;  %v3351_v30 = vpop.permute.xlu0 %1214 }
 0x264   : > { %1400 = vperm.xlu0 %2401, %v1001_v9   ;;  %1403 = vperm.xlu1 %2402, %v1002_v63   ;;  %v1014_v9 = vmul.f32 %v3163_v49, %v4044_v3 }
 0x267   : > { %v3357_v15 = vpop.permute.xlu1 %1223  ;;  %v3359_v29 = vpop.permute.xlu0 %1220 }
 0x268   : > { %1406 = vperm.xlu0 %2401, %v1003_v7   ;;  %1409 = vperm.xlu1 %2402, %v1004_v47   ;;  %v4045_v7 = vld [vmem:[#allocation40_spill] sm:$0xff]  ;;  %v4046_v47 = vld [vmem:[#allocation43_spill] sm:$0xff] }
 0x269   : > { %v1015_v19 = vmul.f32 %v3175_v1, %v4045_v7  ;;  %v1016_v24 = vmul.f32 %v3169_v62, %v4046_v47 }
 0x26b   : > { %v3365_v52 = vpop.permute.xlu1 %1229  ;;  %v3367_v45 = vpop.permute.xlu0 %1226 }
 0x26c   : > { %4035 = vst [vmem:[#allocation10_spill] sm:$0xff] %v3365_v52  ;;  %1412 = vperm.xlu0 %2401, %v1005_v40   ;;  %1415 = vperm.xlu1 %2402, %v1006_v50   ;;  %v3409_v50 = vand.u32 127, %v1570_v23 }
 0x26e   : > { %v1583_v59 = vadd.s32 4294967280, %v3409_v50  ;;  %v3437_v7 = vsub.s32 %v3409_v50, %v3419_v13 }
 0x26f   : > { %v3373_v21 = vpop.permute.xlu1 %1235  ;;  %v3375_v8 = vpop.permute.xlu0 %1232 }
 0x270   : > { %4038 = vst [vmem:[#allocation9_spill] sm:$0xff] %v3375_v8  ;;  %1418 = vperm.xlu0 %2401, %v1007_v5   ;;  %1421 = vperm.xlu1 %2402, %v1008_v56   ;;  %v1017_v5 = vmul.f32 %v3183_v41, %v4047_v33  ;;  %v1018_v56 = vmul.f32 %v3177_v48, %v4048_v61  ;;  %v1597_v61 = vadd.s32 4294967264, %v3409_v50 }
 0x273   : > { %v3381_v25 = vpop.permute.xlu1 %1241  ;;  %v3383_v46 = vpop.permute.xlu0 %1238 }
 0x274   : > { %1424 = vperm.xlu0 %2401, %v1009_v16   ;;  %1427 = vperm.xlu1 %2402, %v1010_v32   ;;  %v1576_v32 = vadd.s32 4294967288, %v3409_v50 }
 0x276   : > { %v3433_v23 = vsub.s32 %v1576_v32, %v3419_v13 }
 0x277   : > { %v3389_v36 = vpop.permute.xlu1 %1247  ;;  %v3391_v0 = vpop.permute.xlu0 %1244 }
 0x278   : > { %1430 = vperm.xlu0 %2401, %v1011_v10   ;;  %1433 = vperm.xlu1 %2402, %v1012_v26   ;;  %v1019_v10 = vmul.f32 %v3191_v27, %v4049_v53  ;;  %v1020_v26 = vmul.f32 %v3185_v31, %v4050_v4  ;;  %v1611_v53 = vadd.s32 4294967248, %v3409_v50  ;;  %v4053_v4 = vld [vmem:[#allocation53_spill] sm:$0xff]  ;;  %v1580_v43 = vrot.slane %v3311_v12, %v3433_v23  ;;  %v4056_v12 = vld [vmem:[#allocation55_spill] sm:$0xff] }
 0x27a   : > { %v3480_v48 = vsub.s32 %v1611_v53, %v3419_v13 }
 0x27b   : > { %v3397_v42 = vpop.permute.xlu1 %1253  ;;  %v3399_v63 = vpop.permute.xlu0 %1250 }
 0x27c   : > { %1436 = vperm.xlu0 %2401, %v1013_v54   ;;  %1439 = vperm.xlu1 %2402, %v1014_v9   ;;  %v1590_v9 = vadd.s32 4294967272, %v3409_v50 }
 0x27f   : > { %v3405_v40 = vpop.permute.xlu1 %1259  ;;  %v3407_v34 = vpop.permute.xlu0 %1256 }
 0x280   : > { %1442 = vperm.xlu0 %2401, %v1015_v19   ;;  %1445 = vperm.xlu1 %2402, %v1016_v24   ;;  %v4051_v19 = vld [vmem:[#allocation46_spill] sm:$0xff]  ;;  %v4052_v24 = vld [vmem:[#allocation49_spill] sm:$0xff] }
 0x281   : > { %v1021_v47 = vmul.f32 %v3199_v14, %v4051_v19  ;;  %v1022_v33 = vmul.f32 %v3193_v39, %v4052_v24  ;;  %v3456_v19 = vsub.s32 %v1590_v9, %v3419_v13  ;;  %v4054_v24 = vld [vmem:[#allocation52_spill] sm:$0xff]  ;;  %v1575_v39 = vrot.slane %v3317_v18, %v3437_v7 }
 0x282   : > { %v1027_v51 = vmul.f32 %v3153_v58, %v4054_v24  ;;  %v3471_v14 = vsub.s32 %v1597_v61, %v3419_v13  ;;  %v1688_v24 = vrot.slane %v3383_v46, %v3433_v23  ;;  %v1028_v18 = vmul.f32 %v3161_v22, %v4056_v12 }
 0x283   : > { %v3415_v2 = vpop.permute.xlu1 %1265  ;;  %v3417_v16 = vpop.permute.xlu0 %1262  ;;  %v1639_v61 = vadd.s32 4294967216, %v3409_v50  ;;  %v1684_v12 = vrot.slane %v3373_v21, %v3437_v7  ;;  %v1582_v53 = vsel %vm1581_vm0, %v1580_v43, %v1575_v39  ;;  %v1698_v21 = vrot.slane %v3391_v0, %v3456_v19  ;;  %v4057_v0 = vld [vmem:[#allocation68_spill] sm:$0xff] }
 0x284   : > { %1448 = vperm.xlu0 %2401, %v1017_v5   ;;  %1451 = vperm.xlu1 %2402, %v1018_v56   ;;  %v3444_v5 = vsub.s32 %v1583_v59, %v3419_v13  ;;  %v1625_v59 = vadd.s32 4294967232, %v3409_v50 }
 0x286   : > { %v1587_v9 = vrot.slane %v3319_v28, %v3444_v5  ;;  %v1594_v28 = vrot.slane %v3327_v60, %v3456_v19  ;;  %v3488_v46 = vsub.s32 %v1625_v59, %v3419_v13  ;;  %v1601_v59 = vrot.slane %v3325_v38, %v3471_v14 }
 0x287   : > { %v3427_v54 = vpop.permute.xlu1 %1271  ;;  %v3429_v3 = vpop.permute.xlu0 %1268 }
 0x288   : > { %1454 = vperm.xlu0 %2401, %v1019_v10   ;;  %1457 = vperm.xlu1 %2402, %v1020_v26   ;;  %v1604_v10 = vadd.s32 4294967256, %v3409_v50  ;;  %v1026_v26 = vmul.f32 %v3155_v37, %v4053_v4  ;;  %v1589_v60 = vsel %vm1588_vm1, %v1587_v9, %v1582_v53  ;;  %v3513_v9 = vsub.s32 %v1639_v61, %v3419_v13 }
 0x28b   : > { %v3447_v56 = vpop.permute.xlu1 %1277  ;;  %v3449_v32 = vpop.permute.xlu0 %1274 }
 0x28c   : > { %1460 = vperm.xlu0 %2401, %v1021_v47   ;;  %1463 = vperm.xlu1 %2402, %v1022_v33   ;;  %v1618_v47 = vadd.s32 4294967240, %v3409_v50  ;;  %v4055_v33 = vld [vmem:[#allocation48_spill] sm:$0xff] }
 0x28d   : > { %v1023_v4 = vmul.f32 %v3207_v35, %v4055_v33  ;;  %v3483_v33 = vsub.s32 %v1604_v10, %v3419_v13  ;;  %v1689_v35 = vsel %vm1581_vm0, %v1688_v24, %v1684_v12  ;;  %v1043_v24 = vmul.f32 %v3153_v58, %v4057_v0 }
 0x28e   : > { %v3495_v10 = vsub.s32 %v1618_v47, %v3419_v13 }
 0x28f   : > { %v1284_v31 = vpop.permute.xlu1 %1283  ;;  %v3475_v27 = vpop.permute.xlu0 %1280  ;;  %v1608_v38 = vrot.slane %v3335_v44, %v3483_v33  ;;  %v1708_v61 = vrot.slane %v3399_v63, %v3483_v33 }
 0x290   : > { %1466 = vperm.xlu0 %2401, %v1023_v4   ;;  %1475 = vperm.xlu1 %2402, %v1026_v26   ;;  %v1632_v4 = vadd.s32 4294967224, %v3409_v50  ;;  %v1693_v26 = vrot.slane %v3381_v25, %v3444_v5  ;;  %v1763_v47 = vrot.slane %v1284_v31, %v3437_v7  ;;  %v1596_v25 = vsel %vm1595_vm2, %v1594_v28, %v1589_v60 }
 0x291   : > { %v1703_v31 = vrot.slane %v3389_v36, %v3471_v14  ;;  %v1603_v36 = vsel %vm1602_vm3, %v1601_v59, %v1596_v25 }
 0x292   : > { %v1694_v12 = vsel %vm1588_vm1, %v1693_v26, %v1689_v35  ;;  %v3524_v53 = vsub.s32 %v1632_v4, %v3419_v13  ;;  %v1653_v35 = vadd.s32 4294967200, %v3409_v50  ;;  %v1615_v4 = vrot.slane %v3333_v17, %v3480_v48  ;;  %v4059_v26 = vld [vmem:[#allocation71_spill] sm:$0xff] }
 0x293   : > { %v1290_v39 = vpop.permute.xlu1 %1289  ;;  %v1287_v43 = vpop.permute.xlu0 %1286  ;;  %v1699_v44 = vsel %vm1595_vm2, %v1698_v21, %v1694_v12  ;;  %v1610_v63 = vsel %vm1609_vm4, %v1608_v38, %v1603_v36  ;;  %v4060_v21 = vld [vmem:[#allocation54_spill] sm:$0xff]  ;;  %v1646_v17 = vadd.s32 4294967208, %v3409_v50  ;;  %v1723_v36 = vrot.slane %v3405_v40, %v3488_v46 }
 0x294   : > { %v1772_v8 = vrot.slane %v1290_v39, %v3444_v5  ;;  %v1767_v52 = vrot.slane %v1287_v43, %v3433_v23  ;;  %1478 = vperm.xlu0 %2401, %v1027_v51   ;;  %1481 = vperm.xlu1 %2402, %v1028_v18   ;;  %v4058_v18 = vld [vmem:[#allocation69_spill] sm:$0xff]  ;;  %v1029_v59 = vmul.f32 %v3167_v6, %v4060_v21  ;;  %v1660_v40 = vadd.s32 4294967192, %v3409_v50 }
 0x295   : > { %v1042_v28 = vmul.f32 %v3155_v37, %v4058_v18  ;;  %v1622_v43 = vrot.slane %v3343_v55, %v3495_v10  ;;  %v1704_v25 = vsel %vm1602_vm3, %v1703_v31, %v1699_v44  ;;  %v3553_v55 = vsub.s32 %v1653_v35, %v3419_v13  ;;  %v4061_v44 = vld [vmem:[#allocation70_spill] sm:$0xff] }
 0x296   : > { %v1768_v51 = vsel %vm1581_vm0, %v1767_v52, %v1763_v47  ;;  %v1713_v47 = vrot.slane %v3397_v42, %v3480_v48  ;;  %v1709_v38 = vsel %vm1609_vm4, %v1708_v61, %v1704_v25  ;;  %v1667_v42 = vadd.s32 4294967184, %v3409_v50  ;;  %v4064_v25 = vld [vmem:[#allocation56_spill] sm:$0xff] }
 0x297   : > { %v1296_v58 = vpop.permute.xlu1 %1295  ;;  %v1773_v60 = vsel %vm1588_vm1, %v1772_v8, %v1768_v51  ;;  %v1293_v39 = vpop.permute.xlu0 %1292  ;;  %v1044_v8 = vmul.f32 %v3161_v22, %v4059_v26  ;;  %v1718_v22 = vrot.slane %v3407_v34, %v3495_v10  ;;  %v1617_v34 = vsel %vm1616_vm5, %v1615_v4, %v1610_v63 }
 0x298   : > { %v1782_v52 = vrot.slane %v1296_v58, %v3471_v14  ;;  %v1777_v37 = vrot.slane %v1293_v39, %v3456_v19  ;;  %1526 = vperm.xlu1 %2402, %v1043_v24   ;;  %1523 = vperm.xlu0 %2401, %v1042_v28   ;;  %v1629_v28 = vrot.slane %v3341_v20, %v3488_v46  ;;  %v4062_v58 = vld [vmem:[#allocation57_spill] sm:$0xff] }
 0x299   : > { %v1045_v61 = vmul.f32 %v3167_v6, %v4061_v44  ;;  %v1624_v39 = vsel %vm1623_vm6, %v1622_v43, %v1617_v34  ;;  %v1714_v35 = vsel %vm1616_vm5, %v1713_v47, %v1709_v38  ;;  %v1636_v20 = vrot.slane %v3351_v30, %v3524_v53 }
 0x29a   : > { %v1778_v0 = vsel %vm1595_vm2, %v1777_v37, %v1773_v60  ;;  %v1030_v60 = vmul.f32 %v3163_v49, %v4062_v58  ;;  %v1719_v37 = vsel %vm1623_vm6, %v1718_v22, %v1714_v35  ;;  %v1728_v6 = vrot.slane %v3417_v16, %v3524_v53  ;;  %v4063_v16 = vld [vmem:[#allocation73_spill] sm:$0xff]  ;;  %v4066_v58 = vld [vmem:[#allocation59_spill] sm:$0xff] }
 0x29b   : > { %v1302_v24 = vpop.permute.xlu1 %1301  ;;  %v1783_v12 = vsel %vm1602_vm3, %v1782_v52, %v1778_v0  ;;  %v1299_v51 = vpop.permute.xlu0 %1298  ;;  %v1631_v30 = vsel %vm1630_vm7, %v1629_v28, %v1624_v39  ;;  %v3584_v43 = vsub.s32 %v1667_v42, %v3419_v13  ;;  %v1046_v47 = vmul.f32 %v3163_v49, %v4063_v16 }
 0x29c   : > { %v1792_v31 = vrot.slane %v1302_v24, %v3480_v48  ;;  %v1787_v18 = vrot.slane %v1299_v51, %v3483_v33  ;;  %1529 = vperm.xlu1 %2402, %v1044_v8   ;;  %1484 = vperm.xlu0 %2401, %v1029_v59   ;;  %v3577_v8 = vsub.s32 %v1646_v17, %v3419_v13  ;;  %v1674_v44 = vadd.s32 4294967176, %v3409_v50 }
 0x29d   : > { %v1031_v0 = vmul.f32 %v3175_v1, %v4064_v25  ;;  %v1643_v17 = vrot.slane %v3349_v11, %v3513_v9  ;;  %v1733_v38 = vrot.slane %v3415_v2, %v3513_v9  ;;  %v1724_v22 = vsel %vm1630_vm7, %v1723_v36, %v1719_v37 }
 0x29e   : > { %v1788_v52 = vsel %vm1609_vm4, %v1787_v18, %v1783_v12  ;;  %v1638_v12 = vsel %vm1637_vm8, %v1636_v20, %v1631_v30  ;;  %v1729_v51 = vsel %vm1637_vm8, %v1728_v6, %v1724_v22  ;;  %v1738_v49 = vrot.slane %v3429_v3, %v3577_v8  ;;  %v4065_v3 = vld [vmem:[#allocation72_spill] sm:$0xff]  ;;  %v4067_v30 = vld [vmem:[#allocation58_spill] sm:$0xff] }
 0x29f   : > { %v1308_v4 = vpop.permute.xlu1 %1307  ;;  %v1793_v63 = vsel %vm1616_vm5, %v1792_v31, %v1788_v52  ;;  %v1305_v26 = vpop.permute.xlu0 %1304  ;;  %v1650_v11 = vrot.slane %v3359_v29, %v3577_v8  ;;  %v3606_v34 = vsub.s32 %v1660_v40, %v3419_v13  ;;  %v1645_v39 = vsel %vm1644_vm9, %v1643_v17, %v1638_v12 }
 0x2a0   : > { %v1802_v21 = vrot.slane %v1308_v4, %v3488_v46  ;;  %v1797_v59 = vrot.slane %v1305_v26, %v3495_v10  ;;  %1532 = vperm.xlu1 %2402, %v1045_v61   ;;  %1487 = vperm.xlu0 %2401, %v1030_v60   ;;  %v1047_v61 = vmul.f32 %v3175_v1, %v4065_v3 }
 0x2a1   : > { %v1032_v60 = vmul.f32 %v3169_v62, %v4066_v58  ;;  %v1743_v29 = vrot.slane %v3427_v54, %v3553_v55  ;;  %v1734_v36 = vsel %vm1644_vm9, %v1733_v38, %v1729_v51  ;;  %v1657_v52 = vrot.slane %v3357_v15, %v3553_v55 }
 0x2a2   : > { %v1798_v24 = vsel %vm1623_vm6, %v1797_v59, %v1793_v63  ;;  %v1739_v50 = vsel %vm1651_vm10, %v1738_v49, %v1734_v36  ;;  %v1748_v1 = vrot.slane %v3449_v32, %v3606_v34  ;;  %v1652_v4 = vsel %vm1651_vm10, %v1650_v11, %v1645_v39  ;;  %v4070_v49 = vld [vmem:[#allocation74_spill] sm:$0xff] }
 0x2a3   : > { %v1314_v42 = vpop.permute.xlu1 %1313  ;;  %v1803_v31 = vsel %vm1630_vm7, %v1802_v21, %v1798_v24  ;;  %v1311_v18 = vpop.permute.xlu0 %1310  ;;  %v1664_v15 = vrot.slane %v3367_v45, %v3606_v34  ;;  %v3630_v26 = vsub.s32 %v1674_v44, %v3419_v13  ;;  %v1048_v32 = vmul.f32 %v3169_v62, %v3135_v57  ;;  %v4069_v24 = vld [vmem:[#allocation9_spill] sm:$0xff] }
 0x2a4   : > { %v1812_v2 = vrot.slane %v1314_v42, %v3513_v9  ;;  %v1807_v28 = vrot.slane %v1311_v18, %v3524_v53  ;;  %1535 = vperm.xlu1 %2402, %v1046_v47   ;;  %1490 = vperm.xlu0 %2401, %v1031_v0   ;;  %v1753_v40 = vrot.slane %v3447_v56, %v3584_v43  ;;  %v4068_v56 = vld [vmem:[#allocation10_spill] sm:$0xff]  ;;  %v4072_v18 = vld [vmem:[#allocation83_spill] sm:$0xff] }
 0x2a5   : > { %v1744_v21 = vsel %vm3919_vm11, %v1743_v29, %v1739_v50  ;;  %v1033_v16 = vmul.f32 %v3183_v41, %v4067_v30  ;;  %v1659_v47 = vsel %vm3919_vm11, %v1657_v52, %v1652_v4  ;;  %v1758_v13 = vrot.slane %v3475_v27, %v3630_v26  ;;  %v4073_v29 = vld [vmem:[#allocation76_spill] sm:$0xff]  ;;  %v4075_v52 = vld [vmem:[#allocation85_spill] sm:$0xff] }
 0x2a6   : > { %v1808_v35 = vsel %vm1637_vm8, %v1807_v28, %v1803_v31  ;;  %v1749_v45 = vsel %vm1665_vm12, %v1748_v1, %v1744_v21  ;;  %v1671_v0 = vrot.slane %v4068_v56, %v3584_v43  ;;  %v1666_v22 = vsel %vm1665_vm12, %v1664_v15, %v1659_v47  ;;  %v4071_v31 = vld [vmem:[#allocation61_spill] sm:$0xff]  ;;  %v4076_v15 = vld [vmem:[#allocation75_spill] sm:$0xff]  ;;  %v4078_v21 = vld [vmem:[#allocation84_spill] sm:$0xff] }
 0x2a7   : > { %v1320_v20 = vpop.permute.xlu1 %1319  ;;  %v1813_v37 = vsel %vm1644_vm9, %v1812_v2, %v1808_v35  ;;  %v1317_v6 = vpop.permute.xlu0 %1316  ;;  %v1678_v27 = vrot.slane %v4069_v24, %v3630_v26  ;;  %v1754_v12 = vsel %vm1672_vm13, %v1753_v40, %v1749_v45  ;;  %v1049_v42 = vmul.f32 %v3183_v41, %v4070_v49  ;;  %v4074_v35 = vld [vmem:[#allocation60_spill] sm:$0xff]  ;;  %v4077_v40 = vld [vmem:[#allocation63_spill] sm:$0xff]  ;;  %v4080_v56 = vld [vmem:[#allocation62_spill] sm:$0xff] }
 0x2a8   : > { %v1822_v54 = vrot.slane %v1320_v20, %v3553_v55  ;;  %v1817_v63 = vrot.slane %v1317_v6, %v3577_v8  ;;  %1538 = vperm.xlu1 %2402, %v1047_v61   ;;  %1493 = vperm.xlu0 %2401, %v1032_v60   ;;  %v1034_v11 = vmul.f32 %v4072_v18, %v4071_v31  ;;  %v4082_v49 = vld [vmem:[#allocation77_spill] sm:$0xff] }
 0x2a9   : > { %v1759_v2 = vsel %vm1679_vm14, %v1758_v13, %v1754_v12  ;;  %v1673_v61 = vsel %vm1672_vm13, %v1671_v0, %v1666_v22  ;;  %v1050_v36 = vmul.f32 %v4072_v18, %v4073_v29  ;;  %v1035_v50 = vmul.f32 %v4075_v52, %v4074_v35  ;;  %v4081_v0 = vld [vmem:[#allocation87_spill] sm:$0xff]  ;;  %v4083_v31 = vld [vmem:[#allocation65_spill] sm:$0xff]  ;;  %v4084_v18 = vld [vmem:[#allocation86_spill] sm:$0xff] }
 0x2aa   : > { %v1818_v59 = vsel %vm1651_vm10, %v1817_v63, %v1813_v37  ;;  %v1680_v60 = vsel %vm1679_vm14, %v1678_v27, %v1673_v61  ;;  %v4087_v29 = vld [vmem:[#allocation51_spill] sm:$0xff] }
 0x2ab   : > { %v1326_v25 = vpop.permute.xlu1 %1325  ;;  %v1823_v57 = vsel %vm3919_vm11, %v1822_v54, %v1818_v59  ;;  %v1323_v62 = vpop.permute.xlu0 %1322  ;;  %vm2236_vm11 = vcmask 1042434   ;;  %v2235_v41 = vsel %vm2234_vm15, %v1759_v2, %v1680_v60  ;;  %v1036_v59 = vmul.f32 %v4078_v21, %v4077_v40  ;;  %v4085_v60 = vld [vmem:[#allocation64_spill] sm:$0xff] }
 0x2ac   : > { %v1832_v17 = vrot.slane %v1326_v25, %v3584_v43  ;;  %v1827_v38 = vrot.slane %v1323_v62, %v3606_v34  ;;  %1541 = vperm.xlu1 %2402, %v1048_v32   ;;  %1496 = vperm.xlu0 %2401, %v1033_v16   ;;  %v1051_v32 = vmul.f32 %v4075_v52, %v4076_v15  ;;  %vm2238_vm15 = vcmask 1043459  }
 0x2ae   : > { %v1828_v51 = vsel %vm1665_vm12, %v1827_v38, %v1823_v57  ;;  %v4079_v57 = vld [vmem:[#allocation78_spill] sm:$0xff] }
 0x2af   : > { %v1332_v28 = vpop.permute.xlu1 %1331  ;;  %v1833_v44 = vsel %vm1672_vm13, %v1832_v17, %v1828_v51  ;;  %v1329_v3 = vpop.permute.xlu0 %1328  ;;  %v1052_v62 = vmul.f32 %v4078_v21, %v4079_v57  ;;  %v1037_v17 = vmul.f32 %v4081_v0, %v4080_v56  ;;  %v4093_v57 = vld [vmem:[#allocation67_spill] sm:$0xff] }
 0x2b0   : > { %v1837_v58 = vrot.slane %v1329_v3, %v3630_v26  ;;  %1544 = vperm.xlu1 %2402, %v1049_v42   ;;  %1499 = vperm.xlu0 %2401, %v1034_v11   ;;  %v1842_v6 = vrot.slane %v1332_v28, %v3437_v7  ;;  %v1053_v42 = vmul.f32 %v4081_v0, %v4082_v49 }
 0x2b1   : > { %v1038_v11 = vmul.f32 %v4084_v18, %v4083_v31 }
 0x2b2   : > { %v1838_v39 = vsel %vm1679_vm14, %v1837_v58, %v1833_v44 }
 0x2b3   : > { %v3668_v1 = vsel %vm2236_vm11, %v1838_v39, %v2235_v41  ;;  %v1338_v20 = vpop.permute.xlu1 %1337  ;;  %v1335_v37 = vpop.permute.xlu0 %1334  ;;  %v4086_v41 = vld [vmem:[#allocation89_spill] sm:$0xff]  ;;  %vm4094_vm11 = vcmask 851712  }
 0x2b4   : > { %v1851_v4 = vrot.slane %v1338_v20, %v3444_v5  ;;  %v1846_v54 = vrot.slane %v1335_v37, %v3433_v23  ;;  %1547 = vperm.xlu1 %2402, %v1050_v36   ;;  %1502 = vperm.xlu0 %2401, %v1035_v50   ;;  %v1039_v39 = vmul.f32 %v4086_v41, %v4085_v60  ;;  %v4088_v36 = vld [vmem:[#allocation88_spill] sm:$0xff] }
 0x2b5   : > { %v1024_v35 = vmul.f32 %v4088_v36, %v4087_v29 }
 0x2b6   : > { %v1847_v63 = vsel %vm1581_vm0, %v1846_v54, %v1842_v6  ;;  %v4089_v54 = vld [vmem:[#allocation50_spill] sm:$0xff] }
 0x2b7   : > { %v1344_v30 = vpop.permute.xlu1 %1343  ;;  %v1852_v16 = vsel %vm1588_vm1, %v1851_v4, %v1847_v63  ;;  %v1341_v47 = vpop.permute.xlu0 %1340  ;;  %v4090_v63 = vld [vmem:[#allocation90_spill] sm:$0xff] }
 0x2b8   : > { %v1861_v45 = vrot.slane %v1344_v30, %v3471_v14  ;;  %v1856_v13 = vrot.slane %v1341_v47, %v3456_v19  ;;  %1550 = vperm.xlu1 %2402, %v1051_v32   ;;  %1505 = vperm.xlu0 %2401, %v1036_v59   ;;  %v1025_v15 = vmul.f32 %v4090_v63, %v4089_v54  ;;  %v4091_v32 = vld [vmem:[#allocation80_spill] sm:$0xff] }
 0x2b9   : > { %v1054_v40 = vmul.f32 %v4084_v18, %v4091_v32 }
 0x2ba   : > { %v1857_v25 = vsel %vm1595_vm2, %v1856_v13, %v1852_v16  ;;  %v4092_v13 = vld [vmem:[#allocation79_spill] sm:$0xff] }
 0x2bb   : > { %v1350_v38 = vpop.permute.xlu1 %1349  ;;  %v1862_v22 = vsel %vm1602_vm3, %v1861_v45, %v1857_v25  ;;  %v1347_v24 = vpop.permute.xlu0 %1346  ;;  %v1055_v25 = vmul.f32 %v4086_v41, %v4092_v13 }
 0x2bc   : > { %v1871_v27 = vrot.slane %v1350_v38, %v3480_v48  ;;  %v1866_v12 = vrot.slane %v1347_v24, %v3483_v33  ;;  %1553 = vperm.xlu1 %2402, %v1052_v62   ;;  %1508 = vperm.xlu0 %2401, %v1037_v17   ;;  %v1040_v62 = vmul.f32 %v4088_v36, %v4093_v57 }
 0x2be   : > { %v1867_v51 = vsel %vm1609_vm4, %v1866_v12, %v1862_v22 }
 0x2bf   : > { %v1356_v2 = vpop.permute.xlu1 %1355  ;;  %v1872_v28 = vsel %vm1616_vm5, %v1871_v27, %v1867_v51  ;;  %v1353_v44 = vpop.permute.xlu0 %1352  ;;  %v4095_v27 = vld [vmem:[#allocation82_spill] sm:$0xff] }
 0x2c0   : > { %v1881_v3 = vrot.slane %v1356_v2, %v3488_v46  ;;  %v1876_v61 = vrot.slane %v1353_v44, %v3495_v10  ;;  %1556 = vperm.xlu1 %2402, %v1053_v42   ;;  %1511 = vperm.xlu0 %2401, %v1038_v11   ;;  %v1056_v12 = vmul.f32 %v4088_v36, %v4095_v27  ;;  %v4096_v51 = vld [vmem:[#allocation66_spill] sm:$0xff] }
 0x2c1   : > { %v1041_v49 = vmul.f32 %v4090_v63, %v4096_v51 }
 0x2c2   : > { %v1877_v58 = vsel %vm1623_vm6, %v1876_v61, %v1872_v28  ;;  %v4097_v28 = vld [vmem:[#allocation81_spill] sm:$0xff] }
 0x2c3   : > { %v1362_v52 = vpop.permute.xlu1 %1361  ;;  %v1882_v50 = vsel %vm1630_vm7, %v1881_v3, %v1877_v58  ;;  %v1359_v20 = vpop.permute.xlu0 %1358  ;;  %v1057_v44 = vmul.f32 %v4090_v63, %v4097_v28 }
 0x2c4   : > { %v1891_v37 = vrot.slane %v1362_v52, %v3513_v9  ;;  %v1886_v6 = vrot.slane %v1359_v20, %v3524_v53  ;;  %1514 = vperm.xlu1 %2402, %v1039_v39   ;;  %1469 = vperm.xlu0 %2401, %v1024_v35  }
 0x2c6   : > { %v1887_v4 = vsel %vm1637_vm8, %v1886_v6, %v1882_v50 }
 0x2c7   : > { %v1368_v21 = vpop.permute.xlu1 %1367  ;;  %v1892_v59 = vsel %vm1644_vm9, %v1891_v37, %v1887_v4  ;;  %v1365_v30 = vpop.permute.xlu0 %1364 }
 0x2c8   : > { %v1901_v16 = vrot.slane %v1368_v21, %v3553_v55  ;;  %v1896_v47 = vrot.slane %v1365_v30, %v3577_v8  ;;  %1472 = vperm.xlu1 %2402, %v1025_v15   ;;  %1559 = vperm.xlu0 %2401, %v1054_v40  }
 0x2ca   : > { %v1897_v45 = vsel %vm1651_vm10, %v1896_v47, %v1892_v59 }
 0x2cb   : > { %v1374_v56 = vpop.permute.xlu1 %1373  ;;  %v1902_v0 = vsel %vm4094_vm11, %v1901_v16, %v1897_v45  ;;  %v1371_v17 = vpop.permute.xlu0 %1370 }
 0x2cc   : > { %v1911_v38 = vrot.slane %v1374_v56, %v3584_v43  ;;  %v1906_v22 = vrot.slane %v1371_v17, %v3606_v34  ;;  %1562 = vperm.xlu1 %2402, %v1055_v25   ;;  %1517 = vperm.xlu0 %2401, %v1040_v62  }
 0x2ce   : > { %v1907_v24 = vsel %vm1665_vm12, %v1906_v22, %v1902_v0 }
 0x2cf   : > { %v1380_v42 = vpop.permute.xlu1 %1379  ;;  %v1912_v31 = vsel %vm1672_vm13, %v1911_v38, %v1907_v24  ;;  %v1377_v18 = vpop.permute.xlu0 %1376 }
 0x2d0   : > { %v1916_v11 = vrot.slane %v1377_v18, %v3630_v26  ;;  %1565 = vperm.xlu1 %2402, %v1056_v12   ;;  %1520 = vperm.xlu0 %2401, %v1041_v49   ;;  %v1921_v60 = vrot.slane %v1380_v42, %v3437_v7 }
 0x2d2   : > { %v1917_v2 = vsel %vm1679_vm14, %v1916_v11, %v1912_v31 }
 0x2d3   : > { %v2239_v3 = vsel %vm2238_vm15, %v1917_v2, %v3668_v1  ;;  %v1386_v61 = vpop.permute.xlu1 %1385  ;;  %v1383_v58 = vpop.permute.xlu0 %1382  ;;  %vm2240_vm15 = vcmask 1044484  }
 0x2d4   : > { %v1930_v41 = vrot.slane %v1386_v61, %v3444_v5  ;;  %v1925_v39 = vrot.slane %v1383_v58, %v3433_v23  ;;  %1568 = vperm.xlu0 %2401, %v1057_v44  }
 0x2d6   : > { %v1926_v29 = vsel %vm1581_vm0, %v1925_v39, %v1921_v60 }
 0x2d7   : > { %v1392_v36 = vpop.permute.xlu1 %1391  ;;  %v1931_v35 = vsel %vm1588_vm1, %v1930_v41, %v1926_v29  ;;  %v1389_v52 = vpop.permute.xlu0 %1388 }
 0x2d8   : > { %v1940_v50 = vrot.slane %v1392_v36, %v3471_v14  ;;  %v1935_v20 = vrot.slane %v1389_v52, %v3456_v19 }
 0x2da   : > { %v1936_v1 = vsel %vm1595_vm2, %v1935_v20, %v1931_v35 }
 0x2db   : > { %v1398_v37 = vpop.permute.xlu1 %1397  ;;  %v1941_v6 = vsel %vm1602_vm3, %v1940_v50, %v1936_v1  ;;  %v1395_v4 = vpop.permute.xlu0 %1394 }
 0x2dc   : > { %v1950_v54 = vrot.slane %v1398_v37, %v3480_v48  ;;  %v1945_v63 = vrot.slane %v1395_v4, %v3483_v33 }
 0x2de   : > { %v1946_v15 = vsel %vm1609_vm4, %v1945_v63, %v1941_v6 }
 0x2df   : > { %v1404_v32 = vpop.permute.xlu1 %1403  ;;  %v1951_v40 = vsel %vm1616_vm5, %v1950_v54, %v1946_v15  ;;  %v1401_v21 = vpop.permute.xlu0 %1400 }
 0x2e0   : > { %v1960_v59 = vrot.slane %v1404_v32, %v3488_v46  ;;  %v1955_v30 = vrot.slane %v1401_v21, %v3495_v10 }
 0x2e2   : > { %v1956_v16 = vsel %vm1623_vm6, %v1955_v30, %v1951_v40 }
 0x2e3   : > { %v1410_v47 = vpop.permute.xlu1 %1409  ;;  %v1961_v45 = vsel %vm1630_vm7, %v1960_v59, %v1956_v16  ;;  %v1407_v13 = vpop.permute.xlu0 %1406 }
 0x2e4   : > { %v1970_v25 = vrot.slane %v1410_v47, %v3513_v9  ;;  %v1965_v57 = vrot.slane %v1407_v13, %v3524_v53 }
 0x2e6   : > { %v1966_v62 = vsel %vm1637_vm8, %v1965_v57, %v1961_v45 }
 0x2e7   : > { %v1416_v56 = vpop.permute.xlu1 %1415  ;;  %v1971_v0 = vsel %vm1644_vm9, %v1970_v25, %v1966_v62  ;;  %v1413_v17 = vpop.permute.xlu0 %1412 }
 0x2e8   : > { %v1980_v38 = vrot.slane %v1416_v56, %v3553_v55  ;;  %v1975_v22 = vrot.slane %v1413_v17, %v3577_v8 }
 0x2ea   : > { %v1976_v24 = vsel %vm1651_vm10, %v1975_v22, %v1971_v0 }
 0x2eb   : > { %v1422_v27 = vpop.permute.xlu1 %1421  ;;  %v1981_v12 = vsel %vm4094_vm11, %v1980_v38, %v1976_v24  ;;  %v1419_v51 = vpop.permute.xlu0 %1418 }
 0x2ec   : > { %v1990_v49 = vrot.slane %v1422_v27, %v3584_v43  ;;  %v1985_v42 = vrot.slane %v1419_v51, %v3606_v34 }
 0x2ee   : > { %v1986_v31 = vsel %vm1665_vm12, %v1985_v42, %v1981_v12 }
 0x2ef   : > { %v1428_v18 = vpop.permute.xlu1 %1427  ;;  %v1991_v11 = vsel %vm1672_vm13, %v1990_v49, %v1986_v31  ;;  %v1425_v2 = vpop.permute.xlu0 %1424 }
 0x2f0   : > { %v1995_v28 = vrot.slane %v1425_v2, %v3630_v26  ;;  %v2000_v41 = vrot.slane %v1428_v18, %v3437_v7 }
 0x2f2   : > { %v1996_v44 = vsel %vm1679_vm14, %v1995_v28, %v1991_v11 }
 0x2f3   : > { %v3763_v61 = vsel %vm2240_vm15, %v1996_v44, %v2239_v3  ;;  %v1434_v58 = vpop.permute.xlu1 %1433  ;;  %v1431_v60 = vpop.permute.xlu0 %1430 }
 0x2f4   : > { %v2009_v39 = vrot.slane %v1434_v58, %v3444_v5  ;;  %v2004_v29 = vrot.slane %v1431_v60, %v3433_v23 }
 0x2f6   : > { %v2005_v36 = vsel %vm1581_vm0, %v2004_v29, %v2000_v41 }
 0x2f7   : > { %v1440_v35 = vpop.permute.xlu1 %1439  ;;  %v2010_v52 = vsel %vm1588_vm1, %v2009_v39, %v2005_v36  ;;  %v1437_v50 = vpop.permute.xlu0 %1436 }
 0x2f8   : > { %v2019_v20 = vrot.slane %v1440_v35, %v3471_v14  ;;  %v2014_v1 = vrot.slane %v1437_v50, %v3456_v19 }
 0x2fa   : > { %v2015_v3 = vsel %vm1595_vm2, %v2014_v1, %v2010_v52 }
 0x2fb   : > { %v1446_v37 = vpop.permute.xlu1 %1445  ;;  %v2020_v6 = vsel %vm1602_vm3, %v2019_v20, %v2015_v3  ;;  %v1443_v4 = vpop.permute.xlu0 %1442 }
 0x2fc   : > { %v2029_v54 = vrot.slane %v1446_v37, %v3480_v48  ;;  %v2024_v63 = vrot.slane %v1443_v4, %v3483_v33 }
 0x2fe   : > { %v2025_v15 = vsel %vm1609_vm4, %v2024_v63, %v2020_v6 }
 0x2ff   : > { %v1452_v32 = vpop.permute.xlu1 %1451  ;;  %v2030_v40 = vsel %vm1616_vm5, %v2029_v54, %v2025_v15  ;;  %v1449_v21 = vpop.permute.xlu0 %1448 }
 0x300   : > { %v2039_v59 = vrot.slane %v1452_v32, %v3488_v46  ;;  %v2034_v30 = vrot.slane %v1449_v21, %v3495_v10 }
 0x302   : > { %v2035_v16 = vsel %vm1623_vm6, %v2034_v30, %v2030_v40 }
 0x303   : > { %v1458_v47 = vpop.permute.xlu1 %1457  ;;  %v2040_v45 = vsel %vm1630_vm7, %v2039_v59, %v2035_v16  ;;  %v1455_v13 = vpop.permute.xlu0 %1454 }
 0x304   : > { %v2049_v25 = vrot.slane %v1458_v47, %v3513_v9  ;;  %v2044_v57 = vrot.slane %v1455_v13, %v3524_v53 }
 0x306   : > { %v2045_v62 = vsel %vm1637_vm8, %v2044_v57, %v2040_v45 }
 0x307   : > { %v1464_v56 = vpop.permute.xlu1 %1463  ;;  %v2050_v0 = vsel %vm1644_vm9, %v2049_v25, %v2045_v62  ;;  %v1461_v17 = vpop.permute.xlu0 %1460 }
 0x308   : > { %v2059_v38 = vrot.slane %v1464_v56, %v3553_v55  ;;  %v2054_v22 = vrot.slane %v1461_v17, %v3577_v8 }
 0x30a   : > { %v2055_v24 = vsel %vm1651_vm10, %v2054_v22, %v2050_v0 }
 0x30b   : > { %v1476_v27 = vpop.permute.xlu1 %1475  ;;  %v2060_v12 = vsel %vm4094_vm11, %v2059_v38, %v2055_v24  ;;  %v1467_v51 = vpop.permute.xlu0 %1466 }
 0x30c   : > { %v2064_v49 = vrot.slane %v1467_v51, %v3606_v34  ;;  %v2079_v40 = vrot.slane %v1476_v27, %v3437_v7 }
 0x30e   : > { %v2065_v42 = vsel %vm1665_vm12, %v2064_v49, %v2060_v12 }
 0x30f   : > { %v1482_v31 = vpop.permute.xlu1 %1481  ;;  %v1479_v18 = vpop.permute.xlu0 %1478 }
 0x310   : > { %v2083_v63 = vrot.slane %v1479_v18, %v3433_v23  ;;  %v2088_v21 = vrot.slane %v1482_v31, %v3444_v5 }
 0x312   : > { %v2084_v16 = vsel %vm1581_vm0, %v2083_v63, %v2079_v40 }
 0x313   : > { %v1527_v11 = vpop.permute.xlu1 %1526  ;;  %v1524_v2 = vpop.permute.xlu0 %1523 }
 0x314   : > { %v2162_v59 = vrot.slane %v1527_v11, %v3433_v23  ;;  %v2158_v30 = vrot.slane %v1524_v2, %v3437_v7  ;;  %v2089_v23 = vsel %vm1588_vm1, %v2088_v21, %v2084_v16 }
 0x316   : > { %v2163_v0 = vsel %vm1581_vm0, %v2162_v59, %v2158_v30  ;;  %vm2242_vm0 = vcmask 1045509  }
 0x317   : > { %v1530_v28 = vpop.permute.xlu1 %1529  ;;  %v1485_v44 = vpop.permute.xlu0 %1484 }
 0x318   : > { %v2167_v47 = vrot.slane %v1530_v28, %v3444_v5  ;;  %v2093_v45 = vrot.slane %v1485_v44, %v3456_v19 }
 0x31a   : > { %v2168_v5 = vsel %vm1588_vm1, %v2167_v47, %v2163_v0  ;;  %v2094_v38 = vsel %vm1595_vm2, %v2093_v45, %v2089_v23  ;;  %vm4098_vm1 = vmmov %vm4094_vm11 }
 0x31b   : > { %v1533_v58 = vpop.permute.xlu1 %1532  ;;  %v1488_v60 = vpop.permute.xlu0 %1487 }
 0x31c   : > { %v2172_v13 = vrot.slane %v1533_v58, %v3456_v19  ;;  %v2098_v25 = vrot.slane %v1488_v60, %v3471_v14 }
 0x31e   : > { %v2173_v22 = vsel %vm1595_vm2, %v2172_v13, %v2168_v5  ;;  %v2099_v24 = vsel %vm1602_vm3, %v2098_v25, %v2094_v38  ;;  %vm4099_vm2 = vmmov %vm4098_vm1 }
 0x31f   : > { %v1536_v41 = vpop.permute.xlu1 %1535  ;;  %v1491_v39 = vpop.permute.xlu0 %1490 }
 0x320   : > { %v2177_v56 = vrot.slane %v1536_v41, %v3471_v14  ;;  %v2103_v7 = vrot.slane %v1491_v39, %v3483_v33 }
 0x322   : > { %v2178_v51 = vsel %vm1602_vm3, %v2177_v56, %v2173_v22  ;;  %v2104_v11 = vsel %vm1609_vm4, %v2103_v7, %v2099_v24  ;;  %vm2244_vm3 = vcmask 1046534   ;;  %v2252_v7 = vstv %s2251_s23 }
 0x323   : > { %v1539_v29 = vpop.permute.xlu1 %1538  ;;  %v1494_v36 = vpop.permute.xlu0 %1493 }
 0x324   : > { %v2108_v19 = vrot.slane %v1494_v36, %v3480_v48  ;;  %v2182_v49 = vrot.slane %v1539_v29, %v3483_v33 }
 0x326   : > { %v2109_v58 = vsel %vm1616_vm5, %v2108_v19, %v2104_v11 }
 0x327   : > { %v1542_v35 = vpop.permute.xlu1 %1541  ;;  %v1497_v52 = vpop.permute.xlu0 %1496 }
 0x328   : > { %v2113_v14 = vrot.slane %v1497_v52, %v3495_v10  ;;  %v2187_v2 = vrot.slane %v1542_v35, %v3480_v48  ;;  %v2183_v52 = vsel %vm1609_vm4, %v2182_v49, %v2178_v51  ;;  %vm2246_vm4 = vcmask 1047559  }
 0x32a   : > { %v2114_v39 = vsel %vm1623_vm6, %v2113_v14, %v2109_v58 }
 0x32b   : > { %v3792_v50 = vpop.permute.xlu1 %1544  ;;  %v1500_v20 = vpop.permute.xlu0 %1499 }
 0x32c   : > { %v2118_v31 = vrot.slane %v1500_v20, %v3488_v46  ;;  %v2192_v60 = vrot.slane %v3792_v50, %v3495_v10 }
 0x32e   : > { %v2119_v10 = vsel %vm1630_vm7, %v2118_v31, %v2114_v39 }
 0x32f   : > { %v3794_v1 = vpop.permute.xlu1 %1547  ;;  %v1503_v3 = vpop.permute.xlu0 %1502 }
 0x330   : > { %v2123_v28 = vrot.slane %v1503_v3, %v3524_v53  ;;  %v2197_v29 = vrot.slane %v3794_v1, %v3488_v46  ;;  %v2188_v3 = vsel %vm1616_vm5, %v2187_v2, %v2183_v52  ;;  %vm2254_vm5 = vcmask 7168  }
 0x332   : > { %v2124_v46 = vsel %vm1637_vm8, %v2123_v28, %v2119_v10 }
 0x333   : > { %v3796_v37 = vpop.permute.xlu1 %1550  ;;  %v1506_v6 = vpop.permute.xlu0 %1505 }
 0x334   : > { %v2128_v41 = vrot.slane %v1506_v6, %v3513_v9  ;;  %v2202_v50 = vrot.slane %v3796_v37, %v3524_v53 }
 0x337   : > { %v3798_v4 = vpop.permute.xlu1 %1553  ;;  %v1509_v54 = vpop.permute.xlu0 %1508 }
 0x338   : > { %v2133_v48 = vrot.slane %v1509_v54, %v3577_v8  ;;  %v2207_v1 = vrot.slane %v3798_v4, %v3513_v9  ;;  %v2129_v54 = vsel %vm1644_vm9, %v2128_v41, %v2124_v46 }
 0x33b   : > { %v3801_v15 = vpop.permute.xlu1 %1556  ;;  %v3803_v32 = vpop.permute.xlu0 %1511 }
 0x33c   : > { %v2138_v20 = vrot.slane %v3803_v32, %v3553_v55  ;;  %v2212_v63 = vrot.slane %v3801_v15, %v3577_v8  ;;  %v2134_v32 = vsel %vm1651_vm10, %v2133_v48, %v2129_v54 }
 0x33e   : > { %v2139_v4 = vsel %vm4098_vm1, %v2138_v20, %v2134_v32 }
 0x33f   : > { %v1515_v57 = vpop.permute.xlu1 %1514  ;;  %v1470_v62 = vpop.permute.xlu0 %1469 }
 0x340   : > { %v2069_v17 = vrot.slane %v1470_v62, %v3584_v43  ;;  %v2143_v6 = vrot.slane %v1515_v57, %v3606_v34 }
 0x342   : > { %v2070_v44 = vsel %vm1672_vm13, %v2069_v17, %v2065_v42  ;;  %v2144_v15 = vsel %vm1665_vm12, %v2143_v6, %v2139_v4 }
 0x343   : > { %v1473_v27 = vpop.permute.xlu1 %1472  ;;  %v1560_v12 = vpop.permute.xlu0 %1559 }
 0x344   : > { %v2074_v18 = vrot.slane %v1473_v27, %v3630_v26  ;;  %v2217_v40 = vrot.slane %v1560_v12, %v3553_v55 }
 0x346   : > { %v2075_v33 = vsel %vm1679_vm14, %v2074_v18, %v2070_v44 }
 0x347   : > { %v1563_v36 = vpop.permute.xlu1 %1562  ;;  %v1518_v35 = vpop.permute.xlu0 %1517  ;;  %v2243_v42 = vsel %vm2242_vm0, %v2075_v33, %v3763_v61  ;;  %v2193_v61 = vsel %vm1623_vm6, %v2192_v60, %v2188_v3 }
 0x348   : > { %v2148_v53 = vrot.slane %v1518_v35, %v3584_v43  ;;  %v2198_v37 = vsel %vm1630_vm7, %v2197_v29, %v2193_v61  ;;  %v2222_v30 = vrot.slane %v1563_v36, %v3606_v34 }
 0x349   : > { %v2203_v9 = vsel %vm1637_vm8, %v2202_v50, %v2198_v37 }
 0x34a   : > { %v2208_v8 = vsel %vm1644_vm9, %v2207_v1, %v2203_v9  ;;  %v2149_v55 = vsel %vm1672_vm13, %v2148_v53, %v2144_v15 }
 0x34b   : > { %v1566_v21 = vpop.permute.xlu1 %1565  ;;  %v1521_v59 = vpop.permute.xlu0 %1520  ;;  %v2213_v45 = vsel %vm1651_vm10, %v2212_v63, %v2208_v8 }
 0x34c   : > { %v2153_v16 = vrot.slane %v1521_v59, %v3630_v26  ;;  %v2227_v47 = vrot.slane %v1566_v21, %v3584_v43  ;;  %v2218_v13 = vsel %vm4099_vm2, %v2217_v40, %v2213_v45 }
 0x34d   : > { %v2223_v34 = vsel %vm1665_vm12, %v2222_v30, %v2218_v13 }
 0x34e   : > { %v2154_v25 = vsel %vm1679_vm14, %v2153_v16, %v2149_v55  ;;  %v2228_v56 = vsel %vm1672_vm13, %v2227_v47, %v2223_v34 }
 0x34f   : > { %v1569_v57 = vpop.permute.xlu0 %1568  ;;  %v2245_v0 = vsel %vm2244_vm3, %v2154_v25, %v2243_v42 }
 0x350   : > { %v2232_v62 = vrot.slane %v1569_v57, %v3630_v26 }
 0x352   : > { %v2233_v43 = vsel %vm1679_vm14, %v2232_v62, %v2228_v56 }
 0x353   : > { %v2247_v23 = vsel %vm2246_vm4, %v2233_v43, %v2245_v0 }
 0x354   : > { %2249 = vadd.xlane.f32.xlu1 %v2247_v23 }
 0x3dd   : > { %v2250_v17 = vpop.xlane.xlu1 %2249 }
 0x3de   : > { %v2253_v26 = vadd.f32 %v2252_v7, %v2250_v17 }
 0x3e0   : > { %2255 = vst.msk [vmem:[%s204_s12] sm:$0xff] %vm2254_vm5, %v2253_v26 }
 0x3e1 PF: > { %p15_p0 = scmp.ge.s32.totalorder %s2547_s18, 4   ;;  %s4100_s14 = smov %s2487_s15 }
 0x3e2   : > { %s4101_s15 = smov %s2491_s16  ;;  %s4102_s16 = smov %s2557_s21 }
 0x3e3   : > { %s4103_s17 = smov %s2547_s18  ;;  %17 = sbr.rel (!%p15_p0) target bundleno = 6 (0x6), region = 76 }
 0x3e8   :  { %2275 = vsyncpa [#allocation4], 1 }
 0x3e9   :  { %2277 = vsyncpa [#allocation4 + $0x1], 1 }
 0x3ea   :  { %2278 = vsyncpa [#allocation6], 1 }

</bundles_post_ra>
